<compile_context>
chip_gen: v6e
topology: v6e:2x2x1
jax: 0.10.0
libtpu: 0.0.40
codegen_flags: <defaults>
</compile_context>

<pallas_src>
import math
import functools

import jax
import jax.numpy as jnp
from jax.experimental import pallas as pl
from jax.experimental.pallas import tpu as pltpu  # noqa: F401  (TPU backend / params if needed)


# ---------------------------------------------------------------------------
# Fused Pallas kernel: 2 encoder layers + skip connection + masked mean pooling
# ---------------------------------------------------------------------------
def fused_window_seq_encoder_kernel(x_ref, mask_ref, len_ref,
                                    wqkv_ref, bqkv_ref, wo_ref, bo_ref,
                                    g1_ref, be1_ref, w1_ref, b1_ref,
                                    w2_ref, b2_ref, g2_ref, be2_ref,
                                    o_ref, *, num_heads, num_layers, skip_every):
    B, S, D = x_ref.shape
    M = B * S
    Hd = D // num_heads
    scale = 1.0 / math.sqrt(Hd)

    mask = mask_ref[...]                              # (B, S) f32, 1.0 = valid
    key_bias = ((1.0 - mask) * (-1e9))[:, None, :]    # (B, 1, S): padded keys -> -1e9

    # Collapse batch into the matmul M dimension for all projections / FFN.
    x2 = x_ref[...].reshape(M, D)                     # (M, D)

    skip = None
    for l in range(num_layers):                       # static loop, weights stay in VMEM
        # --- fused QKV projection (one MXU pass, N = 3D) ---
        qkv = jnp.dot(x2, wqkv_ref[l], preferred_element_type=jnp.float32) + bqkv_ref[l]
        q3 = qkv[:, 0 * D:1 * D].reshape(B, S, D)
        k3 = qkv[:, 1 * D:2 * D].reshape(B, S, D)
        v3 = qkv[:, 2 * D:3 * D].reshape(B, S, D)

        # --- per-head attention (3-D batched einsums over batch), output projection
        #     folded into the head loop: attn += ctx_h @ Wo[h*Hd:(h+1)*Hd, :]  ---
        attn = jnp.zeros((M, D), jnp.float32)
        for h in range(num_heads):
            sl = slice(h * Hd, (h + 1) * Hd)
            qh = q3[:, :, sl]                         # (B, S, Hd)
            kh = k3[:, :, sl]
            vh = v3[:, :, sl]
            s = jnp.einsum('bqd,bkd->bqk', qh, kh,
                           preferred_element_type=jnp.float32) * scale      # (B, S, S)
            s = s + key_bias
            s = s - jnp.max(s, axis=-1, keepdims=True)
            p = jnp.exp(s)
            p = p * pl.reciprocal(jnp.sum(p, axis=-1, keepdims=True), approx=True)
            ctx_h = jnp.einsum('bqk,bkd->bqd', p, vh,
                               preferred_element_type=jnp.float32)          # (B, S, Hd)
            attn = attn + jnp.dot(ctx_h.reshape(M, Hd), wo_ref[l][sl, :],
                                  preferred_element_type=jnp.float32)
        attn = attn + bo_ref[l]

        # --- residual + LayerNorm 1 ---
        h1 = x2 + attn
        mu1 = jnp.mean(h1, axis=-1, keepdims=True)
        var1 = jnp.mean((h1 - mu1) ** 2, axis=-1, keepdims=True)
        h1n = (h1 - mu1) * jax.lax.rsqrt(var1 + 1e-5) * g1_ref[l] + be1_ref[l]

        # --- feed-forward (ReLU) ---
        f = jnp.dot(h1n, w1_ref[l], preferred_element_type=jnp.float32) + b1_ref[l]
        f = jnp.maximum(f, 0.0)
        f = jnp.dot(f, w2_ref[l], preferred_element_type=jnp.float32) + b2_ref[l]

        # --- residual + LayerNorm 2 ---
        h2 = h1n + f
        mu2 = jnp.mean(h2, axis=-1, keepdims=True)
        var2 = jnp.mean((h2 - mu2) ** 2, axis=-1, keepdims=True)
        out2 = (h2 - mu2) * jax.lax.rsqrt(var2 + 1e-5) * g2_ref[l] + be2_ref[l]

        # --- skip connection (mirrors WindowSeqEncoder.forward) ---
        if l == 0:
            skip = out2
            x2 = out2
        elif (l + 1) % skip_every == 0:
            x2 = out2 + skip
            skip = x2
        else:
            x2 = out2

    # --- masked global average pooling: sum_s(window * mask) / seq_len ---
    xb = x2.reshape(B, S, D)
    # (B,1,S) @ (B,S,D) -> (B,1,D) masked row-sum on the MXU, no XLU reduction needed.
    pooled = jnp.einsum('bqs,bsd->bqd', mask[:, None, :], xb,
                        preferred_element_type=jnp.float32).reshape(B, D)
    lens = jnp.maximum(len_ref[...], 1.0)             # guard against seq_len == 0
    o_ref[...] = pooled / lens


# ---------------------------------------------------------------------------
# Wrapper: packs per-layer weights (fused QKV, stacked over layers) and calls the kernel
# ---------------------------------------------------------------------------
def window_seq_encoder_forward(window, key_padding_mask, seq_len, params,
                               *, num_heads, skip_every):
    """Mirrors WindowSeqEncoder.forward for the ['transformer'] configuration."""
    B, S, D = window.shape
    L = len(params)

    mask_f = key_padding_mask.astype(jnp.float32)                 # (B, S), 1.0 = valid
    lens = seq_len.astype(jnp.float32).reshape(B, 1)              # (B, 1)

    # Pack / stack weights once on the host; everything stays VMEM-resident in the kernel.
    wqkv = jnp.stack([jnp.concatenate([p['wq'], p['wk'], p['wv']], axis=1)
                      for p in params])                           # (L, D, 3D)
    bqkv = jnp.stack([jnp.concatenate([p['bq'], p['bk'], p['bv']])[None, :]
                      for p in params])                           # (L, 1, 3D)
    wo = jnp.stack([p['wo'] for p in params])                     # (L, D, D)
    bo = jnp.stack([p['bo'][None, :] for p in params])            # (L, 1, D)
    g1 = jnp.stack([p['g1'][None, :] for p in params])
    be1 = jnp.stack([p['be1'][None, :] for p in params])
    w1 = jnp.stack([p['w1'] for p in params])                     # (L, D, F)
    b1 = jnp.stack([p['b1'][None, :] for p in params])            # (L, 1, F)
    w2 = jnp.stack([p['w2'] for p in params])                     # (L, F, D)
    b2 = jnp.stack([p['b2'][None, :] for p in params])
    g2 = jnp.stack([p['g2'][None, :] for p in params])
    be2 = jnp.stack([p['be2'][None, :] for p in params])

    kernel = functools.partial(fused_window_seq_encoder_kernel,
                               num_heads=num_heads, num_layers=L, skip_every=skip_every)

    # Single fused pallas_call (no grid): all inputs/weights fit VMEM trivially (<100 KiB),
    # so no per-layer launches or HBM activation round-trips.
    return pl.pallas_call(
        kernel,
        out_shape=jax.ShapeDtypeStruct((B, D), jnp.float32),
    )(window, mask_f, lens, wqkv, bqkv, wo, bo,
      g1, be1, w1, b1, w2, b2, g2, be2)


# ---------------------------------------------------------------------------
# Deterministic parameter init (PRNGKey-derived weights, zero biases, unit LN gains)
# ---------------------------------------------------------------------------
def init_layer_params(key, D, F):
    ks = jax.random.split(key, 6)
    s = 0.05
    return dict(
        wq=jax.random.normal(ks[0], (D, D), jnp.float32) * s, bq=jnp.zeros((D,), jnp.float32),
        wk=jax.random.normal(ks[1], (D, D), jnp.float32) * s, bk=jnp.zeros((D,), jnp.float32),
        wv=jax.random.normal(ks[2], (D, D), jnp.float32) * s, bv=jnp.zeros((D,), jnp.float32),
        wo=jax.random.normal(ks[3], (D, D), jnp.float32) * s, bo=jnp.zeros((D,), jnp.float32),
        g1=jnp.ones((D,), jnp.float32), be1=jnp.zeros((D,), jnp.float32),
        w1=jax.random.normal(ks[4], (D, F), jnp.float32) * s, b1=jnp.zeros((F,), jnp.float32),
        w2=jax.random.normal(ks[5], (F, D), jnp.float32) * s, b2=jnp.zeros((D,), jnp.float32),
        g2=jnp.ones((D,), jnp.float32), be2=jnp.zeros((D,), jnp.float32),
    )


# ---------------------------------------------------------------------------
if __name__ == "__main__":
    # Small config consistent with the module:
    #   windowGamesFeatureEncoder.embed_dim = transformer.embed_dim = 32 (no Linear prepended)
    #   num_encoder_layers = 2, skip_connection = 2, num_heads = 4, ffn = 64
    B, S, D, H, F = 2, 8, 32, 4, 64
    NUM_LAYERS, SKIP = 2, 2

    key = jax.random.PRNGKey(0)
    kx, kp = jax.random.split(key)

    window = jax.random.normal(kx, (B, S, D), jnp.float32)
    seq_len = jnp.array([8.0, 5.0], jnp.float32)                     # [B]
    key_padding_mask = (jnp.arange(S)[None, :] < seq_len[:, None])   # [B, S] bool, True = valid

    params = [init_layer_params(k, D, F) for k in jax.random.split(kp, NUM_LAYERS)]

    out = window_seq_encoder_forward(window, key_padding_mask, seq_len, params,
                                     num_heads=H, skip_every=SKIP)
    jax.block_until_ready(out)
    assert out.shape == (B, D) and out.dtype == jnp.float32
    assert bool(jnp.all(jnp.isfinite(out)))
    print("KERNEL_OK")
</pallas_src>

<mosaic_0001>
module attributes {stable_mosaic.version = 11 : i64} {
  func.func @fused_window_seq_encoder_kernel(%arg0: memref<2x8x32xf32, #tpu.memory_space<vmem>>, %arg1: memref<2x8xf32, #tpu.memory_space<vmem>>, %arg2: memref<2x1xf32, #tpu.memory_space<vmem>>, %arg3: memref<2x32x96xf32, #tpu.memory_space<vmem>>, %arg4: memref<2x1x96xf32, #tpu.memory_space<vmem>>, %arg5: memref<2x32x32xf32, #tpu.memory_space<vmem>>, %arg6: memref<2x1x32xf32, #tpu.memory_space<vmem>>, %arg7: memref<2x1x32xf32, #tpu.memory_space<vmem>>, %arg8: memref<2x1x32xf32, #tpu.memory_space<vmem>>, %arg9: memref<2x32x64xf32, #tpu.memory_space<vmem>>, %arg10: memref<2x1x64xf32, #tpu.memory_space<vmem>>, %arg11: memref<2x64x32xf32, #tpu.memory_space<vmem>>, %arg12: memref<2x1x32xf32, #tpu.memory_space<vmem>>, %arg13: memref<2x1x32xf32, #tpu.memory_space<vmem>>, %arg14: memref<2x1x32xf32, #tpu.memory_space<vmem>>, %arg15: memref<2x32xf32, #tpu.memory_space<vmem>>) attributes {dimension_semantics = [], scalar_prefetch = 0 : i64, scratch_operands = 0 : i64, tpu.core_type = #tpu.core_type<tc>} {
    %c0 = arith.constant 0 : index
    %c0_0 = arith.constant 0 : index
    %0 = vector.load %arg1[%c0, %c0_0] : memref<2x8xf32, #tpu.memory_space<vmem>>, vector<2x8xf32>
    %cst = arith.constant 1.000000e+00 : f32
    %1 = vector.broadcast %cst : f32 to vector<2x8xf32>
    %2 = arith.subf %1, %0 : vector<2x8xf32>
    %cst_1 = arith.constant -1.000000e+09 : f32
    %3 = vector.broadcast %cst_1 : f32 to vector<2x8xf32>
    %4 = arith.mulf %2, %3 : vector<2x8xf32>
    %5 = vector.shape_cast %4 : vector<2x8xf32> to vector<2x1x8xf32>
    %c0_2 = arith.constant 0 : index
    %c0_3 = arith.constant 0 : index
    %c0_4 = arith.constant 0 : index
    %6 = vector.load %arg0[%c0_2, %c0_3, %c0_4] : memref<2x8x32xf32, #tpu.memory_space<vmem>>, vector<2x8x32xf32>
    %7 = vector.shape_cast %6 : vector<2x8x32xf32> to vector<16x32xf32>
    %c0_5 = arith.constant 0 : index
    %c0_6 = arith.constant 0 : index
    %c0_7 = arith.constant 0 : index
    %8 = vector.load %arg3[%c0_5, %c0_6, %c0_7] : memref<2x32x96xf32, #tpu.memory_space<vmem>>, vector<1x32x96xf32>
    %9 = vector.shape_cast %8 : vector<1x32x96xf32> to vector<32x96xf32>
    %cst_8 = arith.constant dense<0.000000e+00> : vector<16x96xf32>
    %10 = tpu.matmul %7, %9, %cst_8 {dimension_numbers = #tpu.dot_dimension_numbers<[1], [0], [0], [1], [0, 0, 1, 1], [], []>} : vector<16x32xf32>, vector<32x96xf32>, vector<16x96xf32> -> vector<16x96xf32>
    %c0_9 = arith.constant 0 : index
    %c0_10 = arith.constant 0 : index
    %c0_11 = arith.constant 0 : index
    %11 = vector.load %arg4[%c0_9, %c0_10, %c0_11] : memref<2x1x96xf32, #tpu.memory_space<vmem>>, vector<1x1x96xf32>
    %12 = vector.shape_cast %11 : vector<1x1x96xf32> to vector<1x96xf32>
    %13 = vector.broadcast %12 : vector<1x96xf32> to vector<16x96xf32>
    %14 = arith.addf %10, %13 : vector<16x96xf32>
    %15 = vector.extract_strided_slice %14 {offsets = [0, 0], sizes = [16, 32], strides = [1, 1]} : vector<16x96xf32> to vector<16x32xf32>
    %16 = vector.shape_cast %15 : vector<16x32xf32> to vector<2x8x32xf32>
    %17 = vector.extract_strided_slice %14 {offsets = [0, 32], sizes = [16, 32], strides = [1, 1]} : vector<16x96xf32> to vector<16x32xf32>
    %18 = vector.shape_cast %17 : vector<16x32xf32> to vector<2x8x32xf32>
    %19 = vector.extract_strided_slice %14 {offsets = [0, 64], sizes = [16, 32], strides = [1, 1]} : vector<16x96xf32> to vector<16x32xf32>
    %20 = vector.shape_cast %19 : vector<16x32xf32> to vector<2x8x32xf32>
    %cst_12 = arith.constant 0.000000e+00 : f32
    %21 = vector.broadcast %cst_12 : f32 to vector<16x32xf32>
    %22 = vector.extract_strided_slice %16 {offsets = [0, 0, 0], sizes = [2, 8, 8], strides = [1, 1, 1]} : vector<2x8x32xf32> to vector<2x8x8xf32>
    %23 = vector.extract_strided_slice %18 {offsets = [0, 0, 0], sizes = [2, 8, 8], strides = [1, 1, 1]} : vector<2x8x32xf32> to vector<2x8x8xf32>
    %24 = vector.extract_strided_slice %20 {offsets = [0, 0, 0], sizes = [2, 8, 8], strides = [1, 1, 1]} : vector<2x8x32xf32> to vector<2x8x8xf32>
    "tpu.trace_start"() <{level = 10 : i32, message = "bqd,bkd->bqk"}> : () -> ()
    %cst_13 = arith.constant dense<0.000000e+00> : vector<2x8x8xf32>
    %25 = tpu.matmul %22, %23, %cst_13 {dimension_numbers = #tpu.dot_dimension_numbers<[2], [2], [1], [1], [0, 0, 0, 1, 1, 1], [0], [0]>} : vector<2x8x8xf32>, vector<2x8x8xf32>, vector<2x8x8xf32> -> vector<2x8x8xf32>
    "tpu.trace_stop"() : () -> ()
    %cst_14 = arith.constant 0.353553385 : f32
    %26 = vector.broadcast %cst_14 : f32 to vector<2x8x8xf32>
    %27 = arith.mulf %25, %26 : vector<2x8x8xf32>
    %28 = vector.broadcast %5 : vector<2x1x8xf32> to vector<2x8x8xf32>
    %29 = arith.addf %27, %28 : vector<2x8x8xf32>
    %cst_15 = arith.constant dense<0xFF800000> : vector<2x8xf32>
    %30 = vector.multi_reduction <maximumf>, %29, %cst_15 [2] : vector<2x8x8xf32> to vector<2x8xf32>
    %31 = vector.shape_cast %30 : vector<2x8xf32> to vector<2x8x1xf32>
    %32 = vector.broadcast %31 : vector<2x8x1xf32> to vector<2x8x8xf32>
    %33 = arith.subf %29, %32 : vector<2x8x8xf32>
    %34 = math.exp %33 : vector<2x8x8xf32>
    %cst_16 = arith.constant dense<0.000000e+00> : vector<2x8xf32>
    %35 = vector.multi_reduction <add>, %34, %cst_16 [2] : vector<2x8x8xf32> to vector<2x8xf32>
    %36 = vector.shape_cast %35 : vector<2x8xf32> to vector<2x8x1xf32>
    %37 = tpu.reciprocal %36 {approx = true} : vector<2x8x1xf32> -> vector<2x8x1xf32>
    %38 = vector.broadcast %37 : vector<2x8x1xf32> to vector<2x8x8xf32>
    %39 = arith.mulf %34, %38 : vector<2x8x8xf32>
    "tpu.trace_start"() <{level = 10 : i32, message = "bqk,bkd->bqd"}> : () -> ()
    %cst_17 = arith.constant dense<0.000000e+00> : vector<2x8x8xf32>
    %40 = tpu.matmul %39, %24, %cst_17 {dimension_numbers = #tpu.dot_dimension_numbers<[2], [1], [1], [2], [0, 0, 0, 1, 1, 2], [0], [0]>} : vector<2x8x8xf32>, vector<2x8x8xf32>, vector<2x8x8xf32> -> vector<2x8x8xf32>
    "tpu.trace_stop"() : () -> ()
    %41 = vector.shape_cast %40 : vector<2x8x8xf32> to vector<16x8xf32>
    %c0_18 = arith.constant 0 : index
    %c0_19 = arith.constant 0 : index
    %c0_20 = arith.constant 0 : index
    %42 = vector.load %arg5[%c0_18, %c0_19, %c0_20] : memref<2x32x32xf32, #tpu.memory_space<vmem>>, vector<1x32x32xf32>
    %43 = vector.shape_cast %42 : vector<1x32x32xf32> to vector<32x32xf32>
    %44 = vector.extract_strided_slice %43 {offsets = [0, 0], sizes = [8, 32], strides = [1, 1]} : vector<32x32xf32> to vector<8x32xf32>
    %cst_21 = arith.constant dense<0.000000e+00> : vector<16x32xf32>
    %45 = tpu.matmul %41, %44, %cst_21 {dimension_numbers = #tpu.dot_dimension_numbers<[1], [0], [0], [1], [0, 0, 1, 1], [], []>} : vector<16x8xf32>, vector<8x32xf32>, vector<16x32xf32> -> vector<16x32xf32>
    %46 = arith.addf %21, %45 : vector<16x32xf32>
    %47 = vector.extract_strided_slice %16 {offsets = [0, 0, 8], sizes = [2, 8, 8], strides = [1, 1, 1]} : vector<2x8x32xf32> to vector<2x8x8xf32>
    %48 = vector.extract_strided_slice %18 {offsets = [0, 0, 8], sizes = [2, 8, 8], strides = [1, 1, 1]} : vector<2x8x32xf32> to vector<2x8x8xf32>
    %49 = vector.extract_strided_slice %20 {offsets = [0, 0, 8], sizes = [2, 8, 8], strides = [1, 1, 1]} : vector<2x8x32xf32> to vector<2x8x8xf32>
    "tpu.trace_start"() <{level = 10 : i32, message = "bqd,bkd->bqk"}> : () -> ()
    %cst_22 = arith.constant dense<0.000000e+00> : vector<2x8x8xf32>
    %50 = tpu.matmul %47, %48, %cst_22 {dimension_numbers = #tpu.dot_dimension_numbers<[2], [2], [1], [1], [0, 0, 0, 1, 1, 1], [0], [0]>} : vector<2x8x8xf32>, vector<2x8x8xf32>, vector<2x8x8xf32> -> vector<2x8x8xf32>
    "tpu.trace_stop"() : () -> ()
    %cst_23 = arith.constant 0.353553385 : f32
    %51 = vector.broadcast %cst_23 : f32 to vector<2x8x8xf32>
    %52 = arith.mulf %50, %51 : vector<2x8x8xf32>
    %53 = vector.broadcast %5 : vector<2x1x8xf32> to vector<2x8x8xf32>
    %54 = arith.addf %52, %53 : vector<2x8x8xf32>
    %cst_24 = arith.constant dense<0xFF800000> : vector<2x8xf32>
    %55 = vector.multi_reduction <maximumf>, %54, %cst_24 [2] : vector<2x8x8xf32> to vector<2x8xf32>
    %56 = vector.shape_cast %55 : vector<2x8xf32> to vector<2x8x1xf32>
    %57 = vector.broadcast %56 : vector<2x8x1xf32> to vector<2x8x8xf32>
    %58 = arith.subf %54, %57 : vector<2x8x8xf32>
    %59 = math.exp %58 : vector<2x8x8xf32>
    %cst_25 = arith.constant dense<0.000000e+00> : vector<2x8xf32>
    %60 = vector.multi_reduction <add>, %59, %cst_25 [2] : vector<2x8x8xf32> to vector<2x8xf32>
    %61 = vector.shape_cast %60 : vector<2x8xf32> to vector<2x8x1xf32>
    %62 = tpu.reciprocal %61 {approx = true} : vector<2x8x1xf32> -> vector<2x8x1xf32>
    %63 = vector.broadcast %62 : vector<2x8x1xf32> to vector<2x8x8xf32>
    %64 = arith.mulf %59, %63 : vector<2x8x8xf32>
    "tpu.trace_start"() <{level = 10 : i32, message = "bqk,bkd->bqd"}> : () -> ()
    %cst_26 = arith.constant dense<0.000000e+00> : vector<2x8x8xf32>
    %65 = tpu.matmul %64, %49, %cst_26 {dimension_numbers = #tpu.dot_dimension_numbers<[2], [1], [1], [2], [0, 0, 0, 1, 1, 2], [0], [0]>} : vector<2x8x8xf32>, vector<2x8x8xf32>, vector<2x8x8xf32> -> vector<2x8x8xf32>
    "tpu.trace_stop"() : () -> ()
    %66 = vector.shape_cast %65 : vector<2x8x8xf32> to vector<16x8xf32>
    %c0_27 = arith.constant 0 : index
    %c0_28 = arith.constant 0 : index
    %c0_29 = arith.constant 0 : index
    %67 = vector.load %arg5[%c0_27, %c0_28, %c0_29] : memref<2x32x32xf32, #tpu.memory_space<vmem>>, vector<1x32x32xf32>
    %68 = vector.shape_cast %67 : vector<1x32x32xf32> to vector<32x32xf32>
    %69 = vector.extract_strided_slice %68 {offsets = [8, 0], sizes = [8, 32], strides = [1, 1]} : vector<32x32xf32> to vector<8x32xf32>
    %cst_30 = arith.constant dense<0.000000e+00> : vector<16x32xf32>
    %70 = tpu.matmul %66, %69, %cst_30 {dimension_numbers = #tpu.dot_dimension_numbers<[1], [0], [0], [1], [0, 0, 1, 1], [], []>} : vector<16x8xf32>, vector<8x32xf32>, vector<16x32xf32> -> vector<16x32xf32>
    %71 = arith.addf %46, %70 : vector<16x32xf32>
    %72 = vector.extract_strided_slice %16 {offsets = [0, 0, 16], sizes = [2, 8, 8], strides = [1, 1, 1]} : vector<2x8x32xf32> to vector<2x8x8xf32>
    %73 = vector.extract_strided_slice %18 {offsets = [0, 0, 16], sizes = [2, 8, 8], strides = [1, 1, 1]} : vector<2x8x32xf32> to vector<2x8x8xf32>
    %74 = vector.extract_strided_slice %20 {offsets = [0, 0, 16], sizes = [2, 8, 8], strides = [1, 1, 1]} : vector<2x8x32xf32> to vector<2x8x8xf32>
    "tpu.trace_start"() <{level = 10 : i32, message = "bqd,bkd->bqk"}> : () -> ()
    %cst_31 = arith.constant dense<0.000000e+00> : vector<2x8x8xf32>
    %75 = tpu.matmul %72, %73, %cst_31 {dimension_numbers = #tpu.dot_dimension_numbers<[2], [2], [1], [1], [0, 0, 0, 1, 1, 1], [0], [0]>} : vector<2x8x8xf32>, vector<2x8x8xf32>, vector<2x8x8xf32> -> vector<2x8x8xf32>
    "tpu.trace_stop"() : () -> ()
    %cst_32 = arith.constant 0.353553385 : f32
    %76 = vector.broadcast %cst_32 : f32 to vector<2x8x8xf32>
    %77 = arith.mulf %75, %76 : vector<2x8x8xf32>
    %78 = vector.broadcast %5 : vector<2x1x8xf32> to vector<2x8x8xf32>
    %79 = arith.addf %77, %78 : vector<2x8x8xf32>
    %cst_33 = arith.constant dense<0xFF800000> : vector<2x8xf32>
    %80 = vector.multi_reduction <maximumf>, %79, %cst_33 [2] : vector<2x8x8xf32> to vector<2x8xf32>
    %81 = vector.shape_cast %80 : vector<2x8xf32> to vector<2x8x1xf32>
    %82 = vector.broadcast %81 : vector<2x8x1xf32> to vector<2x8x8xf32>
    %83 = arith.subf %79, %82 : vector<2x8x8xf32>
    %84 = math.exp %83 : vector<2x8x8xf32>
    %cst_34 = arith.constant dense<0.000000e+00> : vector<2x8xf32>
    %85 = vector.multi_reduction <add>, %84, %cst_34 [2] : vector<2x8x8xf32> to vector<2x8xf32>
    %86 = vector.shape_cast %85 : vector<2x8xf32> to vector<2x8x1xf32>
    %87 = tpu.reciprocal %86 {approx = true} : vector<2x8x1xf32> -> vector<2x8x1xf32>
    %88 = vector.broadcast %87 : vector<2x8x1xf32> to vector<2x8x8xf32>
    %89 = arith.mulf %84, %88 : vector<2x8x8xf32>
    "tpu.trace_start"() <{level = 10 : i32, message = "bqk,bkd->bqd"}> : () -> ()
    %cst_35 = arith.constant dense<0.000000e+00> : vector<2x8x8xf32>
    %90 = tpu.matmul %89, %74, %cst_35 {dimension_numbers = #tpu.dot_dimension_numbers<[2], [1], [1], [2], [0, 0, 0, 1, 1, 2], [0], [0]>} : vector<2x8x8xf32>, vector<2x8x8xf32>, vector<2x8x8xf32> -> vector<2x8x8xf32>
    "tpu.trace_stop"() : () -> ()
    %91 = vector.shape_cast %90 : vector<2x8x8xf32> to vector<16x8xf32>
    %c0_36 = arith.constant 0 : index
    %c0_37 = arith.constant 0 : index
    %c0_38 = arith.constant 0 : index
    %92 = vector.load %arg5[%c0_36, %c0_37, %c0_38] : memref<2x32x32xf32, #tpu.memory_space<vmem>>, vector<1x32x32xf32>
    %93 = vector.shape_cast %92 : vector<1x32x32xf32> to vector<32x32xf32>
    %94 = vector.extract_strided_slice %93 {offsets = [16, 0], sizes = [8, 32], strides = [1, 1]} : vector<32x32xf32> to vector<8x32xf32>
    %cst_39 = arith.constant dense<0.000000e+00> : vector<16x32xf32>
    %95 = tpu.matmul %91, %94, %cst_39 {dimension_numbers = #tpu.dot_dimension_numbers<[1], [0], [0], [1], [0, 0, 1, 1], [], []>} : vector<16x8xf32>, vector<8x32xf32>, vector<16x32xf32> -> vector<16x32xf32>
    %96 = arith.addf %71, %95 : vector<16x32xf32>
    %97 = vector.extract_strided_slice %16 {offsets = [0, 0, 24], sizes = [2, 8, 8], strides = [1, 1, 1]} : vector<2x8x32xf32> to vector<2x8x8xf32>
    %98 = vector.extract_strided_slice %18 {offsets = [0, 0, 24], sizes = [2, 8, 8], strides = [1, 1, 1]} : vector<2x8x32xf32> to vector<2x8x8xf32>
    %99 = vector.extract_strided_slice %20 {offsets = [0, 0, 24], sizes = [2, 8, 8], strides = [1, 1, 1]} : vector<2x8x32xf32> to vector<2x8x8xf32>
    "tpu.trace_start"() <{level = 10 : i32, message = "bqd,bkd->bqk"}> : () -> ()
    %cst_40 = arith.constant dense<0.000000e+00> : vector<2x8x8xf32>
    %100 = tpu.matmul %97, %98, %cst_40 {dimension_numbers = #tpu.dot_dimension_numbers<[2], [2], [1], [1], [0, 0, 0, 1, 1, 1], [0], [0]>} : vector<2x8x8xf32>, vector<2x8x8xf32>, vector<2x8x8xf32> -> vector<2x8x8xf32>
    "tpu.trace_stop"() : () -> ()
    %cst_41 = arith.constant 0.353553385 : f32
    %101 = vector.broadcast %cst_41 : f32 to vector<2x8x8xf32>
    %102 = arith.mulf %100, %101 : vector<2x8x8xf32>
    %103 = vector.broadcast %5 : vector<2x1x8xf32> to vector<2x8x8xf32>
    %104 = arith.addf %102, %103 : vector<2x8x8xf32>
    %cst_42 = arith.constant dense<0xFF800000> : vector<2x8xf32>
    %105 = vector.multi_reduction <maximumf>, %104, %cst_42 [2] : vector<2x8x8xf32> to vector<2x8xf32>
    %106 = vector.shape_cast %105 : vector<2x8xf32> to vector<2x8x1xf32>
    %107 = vector.broadcast %106 : vector<2x8x1xf32> to vector<2x8x8xf32>
    %108 = arith.subf %104, %107 : vector<2x8x8xf32>
    %109 = math.exp %108 : vector<2x8x8xf32>
    %cst_43 = arith.constant dense<0.000000e+00> : vector<2x8xf32>
    %110 = vector.multi_reduction <add>, %109, %cst_43 [2] : vector<2x8x8xf32> to vector<2x8xf32>
    %111 = vector.shape_cast %110 : vector<2x8xf32> to vector<2x8x1xf32>
    %112 = tpu.reciprocal %111 {approx = true} : vector<2x8x1xf32> -> vector<2x8x1xf32>
    %113 = vector.broadcast %112 : vector<2x8x1xf32> to vector<2x8x8xf32>
    %114 = arith.mulf %109, %113 : vector<2x8x8xf32>
    "tpu.trace_start"() <{level = 10 : i32, message = "bqk,bkd->bqd"}> : () -> ()
    %cst_44 = arith.constant dense<0.000000e+00> : vector<2x8x8xf32>
    %115 = tpu.matmul %114, %99, %cst_44 {dimension_numbers = #tpu.dot_dimension_numbers<[2], [1], [1], [2], [0, 0, 0, 1, 1, 2], [0], [0]>} : vector<2x8x8xf32>, vector<2x8x8xf32>, vector<2x8x8xf32> -> vector<2x8x8xf32>
    "tpu.trace_stop"() : () -> ()
    %116 = vector.shape_cast %115 : vector<2x8x8xf32> to vector<16x8xf32>
    %c0_45 = arith.constant 0 : index
    %c0_46 = arith.constant 0 : index
    %c0_47 = arith.constant 0 : index
    %117 = vector.load %arg5[%c0_45, %c0_46, %c0_47] : memref<2x32x32xf32, #tpu.memory_space<vmem>>, vector<1x32x32xf32>
    %118 = vector.shape_cast %117 : vector<1x32x32xf32> to vector<32x32xf32>
    %119 = vector.extract_strided_slice %118 {offsets = [24, 0], sizes = [8, 32], strides = [1, 1]} : vector<32x32xf32> to vector<8x32xf32>
    %cst_48 = arith.constant dense<0.000000e+00> : vector<16x32xf32>
    %120 = tpu.matmul %116, %119, %cst_48 {dimension_numbers = #tpu.dot_dimension_numbers<[1], [0], [0], [1], [0, 0, 1, 1], [], []>} : vector<16x8xf32>, vector<8x32xf32>, vector<16x32xf32> -> vector<16x32xf32>
    %121 = arith.addf %96, %120 : vector<16x32xf32>
    %c0_49 = arith.constant 0 : index
    %c0_50 = arith.constant 0 : index
    %c0_51 = arith.constant 0 : index
    %122 = vector.load %arg6[%c0_49, %c0_50, %c0_51] : memref<2x1x32xf32, #tpu.memory_space<vmem>>, vector<1x1x32xf32>
    %123 = vector.shape_cast %122 : vector<1x1x32xf32> to vector<1x32xf32>
    %124 = vector.broadcast %123 : vector<1x32xf32> to vector<16x32xf32>
    %125 = arith.addf %121, %124 : vector<16x32xf32>
    %126 = arith.addf %7, %125 : vector<16x32xf32>
    %cst_52 = arith.constant dense<0.000000e+00> : vector<16xf32>
    %127 = vector.multi_reduction <add>, %126, %cst_52 [1] : vector<16x32xf32> to vector<16xf32>
    %128 = vector.shape_cast %127 : vector<16xf32> to vector<16x1xf32>
    %cst_53 = arith.constant 3.200000e+01 : f32
    %129 = vector.broadcast %cst_53 : f32 to vector<16x1xf32>
    %130 = arith.divf %128, %129 : vector<16x1xf32>
    %131 = vector.broadcast %130 : vector<16x1xf32> to vector<16x32xf32>
    %132 = arith.subf %126, %131 : vector<16x32xf32>
    %133 = arith.mulf %132, %132 : vector<16x32xf32>
    %cst_54 = arith.constant dense<0.000000e+00> : vector<16xf32>
    %134 = vector.multi_reduction <add>, %133, %cst_54 [1] : vector<16x32xf32> to vector<16xf32>
    %135 = vector.shape_cast %134 : vector<16xf32> to vector<16x1xf32>
    %cst_55 = arith.constant 3.200000e+01 : f32
    %136 = vector.broadcast %cst_55 : f32 to vector<16x1xf32>
    %137 = arith.divf %135, %136 : vector<16x1xf32>
    %138 = vector.broadcast %130 : vector<16x1xf32> to vector<16x32xf32>
    %139 = arith.subf %126, %138 : vector<16x32xf32>
    %cst_56 = arith.constant 9.99999974E-6 : f32
    %140 = vector.broadcast %cst_56 : f32 to vector<16x1xf32>
    %141 = arith.addf %137, %140 : vector<16x1xf32>
    %142 = math.rsqrt %141 : vector<16x1xf32>
    %143 = vector.broadcast %142 : vector<16x1xf32> to vector<16x32xf32>
    %144 = arith.mulf %139, %143 : vector<16x32xf32>
    %c0_57 = arith.constant 0 : index
    %c0_58 = arith.constant 0 : index
    %c0_59 = arith.constant 0 : index
    %145 = vector.load %arg7[%c0_57, %c0_58, %c0_59] : memref<2x1x32xf32, #tpu.memory_space<vmem>>, vector<1x1x32xf32>
    %146 = vector.shape_cast %145 : vector<1x1x32xf32> to vector<1x32xf32>
    %147 = vector.broadcast %146 : vector<1x32xf32> to vector<16x32xf32>
    %148 = arith.mulf %144, %147 : vector<16x32xf32>
    %c0_60 = arith.constant 0 : index
    %c0_61 = arith.constant 0 : index
    %c0_62 = arith.constant 0 : index
    %149 = vector.load %arg8[%c0_60, %c0_61, %c0_62] : memref<2x1x32xf32, #tpu.memory_space<vmem>>, vector<1x1x32xf32>
    %150 = vector.shape_cast %149 : vector<1x1x32xf32> to vector<1x32xf32>
    %151 = vector.broadcast %150 : vector<1x32xf32> to vector<16x32xf32>
    %152 = arith.addf %148, %151 : vector<16x32xf32>
    %c0_63 = arith.constant 0 : index
    %c0_64 = arith.constant 0 : index
    %c0_65 = arith.constant 0 : index
    %153 = vector.load %arg9[%c0_63, %c0_64, %c0_65] : memref<2x32x64xf32, #tpu.memory_space<vmem>>, vector<1x32x64xf32>
    %154 = vector.shape_cast %153 : vector<1x32x64xf32> to vector<32x64xf32>
    %cst_66 = arith.constant dense<0.000000e+00> : vector<16x64xf32>
    %155 = tpu.matmul %152, %154, %cst_66 {dimension_numbers = #tpu.dot_dimension_numbers<[1], [0], [0], [1], [0, 0, 1, 1], [], []>} : vector<16x32xf32>, vector<32x64xf32>, vector<16x64xf32> -> vector<16x64xf32>
    %c0_67 = arith.constant 0 : index
    %c0_68 = arith.constant 0 : index
    %c0_69 = arith.constant 0 : index
    %156 = vector.load %arg10[%c0_67, %c0_68, %c0_69] : memref<2x1x64xf32, #tpu.memory_space<vmem>>, vector<1x1x64xf32>
    %157 = vector.shape_cast %156 : vector<1x1x64xf32> to vector<1x64xf32>
    %158 = vector.broadcast %157 : vector<1x64xf32> to vector<16x64xf32>
    %159 = arith.addf %155, %158 : vector<16x64xf32>
    %cst_70 = arith.constant 0.000000e+00 : f32
    %160 = vector.broadcast %cst_70 : f32 to vector<16x64xf32>
    %161 = arith.maximumf %159, %160 : vector<16x64xf32>
    %c0_71 = arith.constant 0 : index
    %c0_72 = arith.constant 0 : index
    %c0_73 = arith.constant 0 : index
    %162 = vector.load %arg11[%c0_71, %c0_72, %c0_73] : memref<2x64x32xf32, #tpu.memory_space<vmem>>, vector<1x64x32xf32>
    %163 = vector.shape_cast %162 : vector<1x64x32xf32> to vector<64x32xf32>
    %cst_74 = arith.constant dense<0.000000e+00> : vector<16x32xf32>
    %164 = tpu.matmul %161, %163, %cst_74 {dimension_numbers = #tpu.dot_dimension_numbers<[1], [0], [0], [1], [0, 0, 1, 1], [], []>} : vector<16x64xf32>, vector<64x32xf32>, vector<16x32xf32> -> vector<16x32xf32>
    %c0_75 = arith.constant 0 : index
    %c0_76 = arith.constant 0 : index
    %c0_77 = arith.constant 0 : index
    %165 = vector.load %arg12[%c0_75, %c0_76, %c0_77] : memref<2x1x32xf32, #tpu.memory_space<vmem>>, vector<1x1x32xf32>
    %166 = vector.shape_cast %165 : vector<1x1x32xf32> to vector<1x32xf32>
    %167 = vector.broadcast %166 : vector<1x32xf32> to vector<16x32xf32>
    %168 = arith.addf %164, %167 : vector<16x32xf32>
    %169 = arith.addf %152, %168 : vector<16x32xf32>
    %cst_78 = arith.constant dense<0.000000e+00> : vector<16xf32>
    %170 = vector.multi_reduction <add>, %169, %cst_78 [1] : vector<16x32xf32> to vector<16xf32>
    %171 = vector.shape_cast %170 : vector<16xf32> to vector<16x1xf32>
    %cst_79 = arith.constant 3.200000e+01 : f32
    %172 = vector.broadcast %cst_79 : f32 to vector<16x1xf32>
    %173 = arith.divf %171, %172 : vector<16x1xf32>
    %174 = vector.broadcast %173 : vector<16x1xf32> to vector<16x32xf32>
    %175 = arith.subf %169, %174 : vector<16x32xf32>
    %176 = arith.mulf %175, %175 : vector<16x32xf32>
    %cst_80 = arith.constant dense<0.000000e+00> : vector<16xf32>
    %177 = vector.multi_reduction <add>, %176, %cst_80 [1] : vector<16x32xf32> to vector<16xf32>
    %178 = vector.shape_cast %177 : vector<16xf32> to vector<16x1xf32>
    %cst_81 = arith.constant 3.200000e+01 : f32
    %179 = vector.broadcast %cst_81 : f32 to vector<16x1xf32>
    %180 = arith.divf %178, %179 : vector<16x1xf32>
    %181 = vector.broadcast %173 : vector<16x1xf32> to vector<16x32xf32>
    %182 = arith.subf %169, %181 : vector<16x32xf32>
    %cst_82 = arith.constant 9.99999974E-6 : f32
    %183 = vector.broadcast %cst_82 : f32 to vector<16x1xf32>
    %184 = arith.addf %180, %183 : vector<16x1xf32>
    %185 = math.rsqrt %184 : vector<16x1xf32>
    %186 = vector.broadcast %185 : vector<16x1xf32> to vector<16x32xf32>
    %187 = arith.mulf %182, %186 : vector<16x32xf32>
    %c0_83 = arith.constant 0 : index
    %c0_84 = arith.constant 0 : index
    %c0_85 = arith.constant 0 : index
    %188 = vector.load %arg13[%c0_83, %c0_84, %c0_85] : memref<2x1x32xf32, #tpu.memory_space<vmem>>, vector<1x1x32xf32>
    %189 = vector.shape_cast %188 : vector<1x1x32xf32> to vector<1x32xf32>
    %190 = vector.broadcast %189 : vector<1x32xf32> to vector<16x32xf32>
    %191 = arith.mulf %187, %190 : vector<16x32xf32>
    %c0_86 = arith.constant 0 : index
    %c0_87 = arith.constant 0 : index
    %c0_88 = arith.constant 0 : index
    %192 = vector.load %arg14[%c0_86, %c0_87, %c0_88] : memref<2x1x32xf32, #tpu.memory_space<vmem>>, vector<1x1x32xf32>
    %193 = vector.shape_cast %192 : vector<1x1x32xf32> to vector<1x32xf32>
    %194 = vector.broadcast %193 : vector<1x32xf32> to vector<16x32xf32>
    %195 = arith.addf %191, %194 : vector<16x32xf32>
    %c1 = arith.constant 1 : index
    %c0_89 = arith.constant 0 : index
    %c0_90 = arith.constant 0 : index
    %196 = vector.load %arg3[%c1, %c0_89, %c0_90] : memref<2x32x96xf32, #tpu.memory_space<vmem>>, vector<1x32x96xf32>
    %197 = vector.shape_cast %196 : vector<1x32x96xf32> to vector<32x96xf32>
    %cst_91 = arith.constant dense<0.000000e+00> : vector<16x96xf32>
    %198 = tpu.matmul %195, %197, %cst_91 {dimension_numbers = #tpu.dot_dimension_numbers<[1], [0], [0], [1], [0, 0, 1, 1], [], []>} : vector<16x32xf32>, vector<32x96xf32>, vector<16x96xf32> -> vector<16x96xf32>
    %c1_92 = arith.constant 1 : index
    %c0_93 = arith.constant 0 : index
    %c0_94 = arith.constant 0 : index
    %199 = vector.load %arg4[%c1_92, %c0_93, %c0_94] : memref<2x1x96xf32, #tpu.memory_space<vmem>>, vector<1x1x96xf32>
    %200 = vector.shape_cast %199 : vector<1x1x96xf32> to vector<1x96xf32>
    %201 = vector.broadcast %200 : vector<1x96xf32> to vector<16x96xf32>
    %202 = arith.addf %198, %201 : vector<16x96xf32>
    %203 = vector.extract_strided_slice %202 {offsets = [0, 0], sizes = [16, 32], strides = [1, 1]} : vector<16x96xf32> to vector<16x32xf32>
    %204 = vector.shape_cast %203 : vector<16x32xf32> to vector<2x8x32xf32>
    %205 = vector.extract_strided_slice %202 {offsets = [0, 32], sizes = [16, 32], strides = [1, 1]} : vector<16x96xf32> to vector<16x32xf32>
    %206 = vector.shape_cast %205 : vector<16x32xf32> to vector<2x8x32xf32>
    %207 = vector.extract_strided_slice %202 {offsets = [0, 64], sizes = [16, 32], strides = [1, 1]} : vector<16x96xf32> to vector<16x32xf32>
    %208 = vector.shape_cast %207 : vector<16x32xf32> to vector<2x8x32xf32>
    %cst_95 = arith.constant 0.000000e+00 : f32
    %209 = vector.broadcast %cst_95 : f32 to vector<16x32xf32>
    %210 = vector.extract_strided_slice %204 {offsets = [0, 0, 0], sizes = [2, 8, 8], strides = [1, 1, 1]} : vector<2x8x32xf32> to vector<2x8x8xf32>
    %211 = vector.extract_strided_slice %206 {offsets = [0, 0, 0], sizes = [2, 8, 8], strides = [1, 1, 1]} : vector<2x8x32xf32> to vector<2x8x8xf32>
    %212 = vector.extract_strided_slice %208 {offsets = [0, 0, 0], sizes = [2, 8, 8], strides = [1, 1, 1]} : vector<2x8x32xf32> to vector<2x8x8xf32>
    "tpu.trace_start"() <{level = 10 : i32, message = "bqd,bkd->bqk"}> : () -> ()
    %cst_96 = arith.constant dense<0.000000e+00> : vector<2x8x8xf32>
    %213 = tpu.matmul %210, %211, %cst_96 {dimension_numbers = #tpu.dot_dimension_numbers<[2], [2], [1], [1], [0, 0, 0, 1, 1, 1], [0], [0]>} : vector<2x8x8xf32>, vector<2x8x8xf32>, vector<2x8x8xf32> -> vector<2x8x8xf32>
    "tpu.trace_stop"() : () -> ()
    %cst_97 = arith.constant 0.353553385 : f32
    %214 = vector.broadcast %cst_97 : f32 to vector<2x8x8xf32>
    %215 = arith.mulf %213, %214 : vector<2x8x8xf32>
    %216 = vector.broadcast %5 : vector<2x1x8xf32> to vector<2x8x8xf32>
    %217 = arith.addf %215, %216 : vector<2x8x8xf32>
    %cst_98 = arith.constant dense<0xFF800000> : vector<2x8xf32>
    %218 = vector.multi_reduction <maximumf>, %217, %cst_98 [2] : vector<2x8x8xf32> to vector<2x8xf32>
    %219 = vector.shape_cast %218 : vector<2x8xf32> to vector<2x8x1xf32>
    %220 = vector.broadcast %219 : vector<2x8x1xf32> to vector<2x8x8xf32>
    %221 = arith.subf %217, %220 : vector<2x8x8xf32>
    %222 = math.exp %221 : vector<2x8x8xf32>
    %cst_99 = arith.constant dense<0.000000e+00> : vector<2x8xf32>
    %223 = vector.multi_reduction <add>, %222, %cst_99 [2] : vector<2x8x8xf32> to vector<2x8xf32>
    %224 = vector.shape_cast %223 : vector<2x8xf32> to vector<2x8x1xf32>
    %225 = tpu.reciprocal %224 {approx = true} : vector<2x8x1xf32> -> vector<2x8x1xf32>
    %226 = vector.broadcast %225 : vector<2x8x1xf32> to vector<2x8x8xf32>
    %227 = arith.mulf %222, %226 : vector<2x8x8xf32>
    "tpu.trace_start"() <{level = 10 : i32, message = "bqk,bkd->bqd"}> : () -> ()
    %cst_100 = arith.constant dense<0.000000e+00> : vector<2x8x8xf32>
    %228 = tpu.matmul %227, %212, %cst_100 {dimension_numbers = #tpu.dot_dimension_numbers<[2], [1], [1], [2], [0, 0, 0, 1, 1, 2], [0], [0]>} : vector<2x8x8xf32>, vector<2x8x8xf32>, vector<2x8x8xf32> -> vector<2x8x8xf32>
    "tpu.trace_stop"() : () -> ()
    %229 = vector.shape_cast %228 : vector<2x8x8xf32> to vector<16x8xf32>
    %c1_101 = arith.constant 1 : index
    %c0_102 = arith.constant 0 : index
    %c0_103 = arith.constant 0 : index
    %230 = vector.load %arg5[%c1_101, %c0_102, %c0_103] : memref<2x32x32xf32, #tpu.memory_space<vmem>>, vector<1x32x32xf32>
    %231 = vector.shape_cast %230 : vector<1x32x32xf32> to vector<32x32xf32>
    %232 = vector.extract_strided_slice %231 {offsets = [0, 0], sizes = [8, 32], strides = [1, 1]} : vector<32x32xf32> to vector<8x32xf32>
    %cst_104 = arith.constant dense<0.000000e+00> : vector<16x32xf32>
    %233 = tpu.matmul %229, %232, %cst_104 {dimension_numbers = #tpu.dot_dimension_numbers<[1], [0], [0], [1], [0, 0, 1, 1], [], []>} : vector<16x8xf32>, vector<8x32xf32>, vector<16x32xf32> -> vector<16x32xf32>
    %234 = arith.addf %209, %233 : vector<16x32xf32>
    %235 = vector.extract_strided_slice %204 {offsets = [0, 0, 8], sizes = [2, 8, 8], strides = [1, 1, 1]} : vector<2x8x32xf32> to vector<2x8x8xf32>
    %236 = vector.extract_strided_slice %206 {offsets = [0, 0, 8], sizes = [2, 8, 8], strides = [1, 1, 1]} : vector<2x8x32xf32> to vector<2x8x8xf32>
    %237 = vector.extract_strided_slice %208 {offsets = [0, 0, 8], sizes = [2, 8, 8], strides = [1, 1, 1]} : vector<2x8x32xf32> to vector<2x8x8xf32>
    "tpu.trace_start"() <{level = 10 : i32, message = "bqd,bkd->bqk"}> : () -> ()
    %cst_105 = arith.constant dense<0.000000e+00> : vector<2x8x8xf32>
    %238 = tpu.matmul %235, %236, %cst_105 {dimension_numbers = #tpu.dot_dimension_numbers<[2], [2], [1], [1], [0, 0, 0, 1, 1, 1], [0], [0]>} : vector<2x8x8xf32>, vector<2x8x8xf32>, vector<2x8x8xf32> -> vector<2x8x8xf32>
    "tpu.trace_stop"() : () -> ()
    %cst_106 = arith.constant 0.353553385 : f32
    %239 = vector.broadcast %cst_106 : f32 to vector<2x8x8xf32>
    %240 = arith.mulf %238, %239 : vector<2x8x8xf32>
    %241 = vector.broadcast %5 : vector<2x1x8xf32> to vector<2x8x8xf32>
    %242 = arith.addf %240, %241 : vector<2x8x8xf32>
    %cst_107 = arith.constant dense<0xFF800000> : vector<2x8xf32>
    %243 = vector.multi_reduction <maximumf>, %242, %cst_107 [2] : vector<2x8x8xf32> to vector<2x8xf32>
    %244 = vector.shape_cast %243 : vector<2x8xf32> to vector<2x8x1xf32>
    %245 = vector.broadcast %244 : vector<2x8x1xf32> to vector<2x8x8xf32>
    %246 = arith.subf %242, %245 : vector<2x8x8xf32>
    %247 = math.exp %246 : vector<2x8x8xf32>
    %cst_108 = arith.constant dense<0.000000e+00> : vector<2x8xf32>
    %248 = vector.multi_reduction <add>, %247, %cst_108 [2] : vector<2x8x8xf32> to vector<2x8xf32>
    %249 = vector.shape_cast %248 : vector<2x8xf32> to vector<2x8x1xf32>
    %250 = tpu.reciprocal %249 {approx = true} : vector<2x8x1xf32> -> vector<2x8x1xf32>
    %251 = vector.broadcast %250 : vector<2x8x1xf32> to vector<2x8x8xf32>
    %252 = arith.mulf %247, %251 : vector<2x8x8xf32>
    "tpu.trace_start"() <{level = 10 : i32, message = "bqk,bkd->bqd"}> : () -> ()
    %cst_109 = arith.constant dense<0.000000e+00> : vector<2x8x8xf32>
    %253 = tpu.matmul %252, %237, %cst_109 {dimension_numbers = #tpu.dot_dimension_numbers<[2], [1], [1], [2], [0, 0, 0, 1, 1, 2], [0], [0]>} : vector<2x8x8xf32>, vector<2x8x8xf32>, vector<2x8x8xf32> -> vector<2x8x8xf32>
    "tpu.trace_stop"() : () -> ()
    %254 = vector.shape_cast %253 : vector<2x8x8xf32> to vector<16x8xf32>
    %c1_110 = arith.constant 1 : index
    %c0_111 = arith.constant 0 : index
    %c0_112 = arith.constant 0 : index
    %255 = vector.load %arg5[%c1_110, %c0_111, %c0_112] : memref<2x32x32xf32, #tpu.memory_space<vmem>>, vector<1x32x32xf32>
    %256 = vector.shape_cast %255 : vector<1x32x32xf32> to vector<32x32xf32>
    %257 = vector.extract_strided_slice %256 {offsets = [8, 0], sizes = [8, 32], strides = [1, 1]} : vector<32x32xf32> to vector<8x32xf32>
    %cst_113 = arith.constant dense<0.000000e+00> : vector<16x32xf32>
    %258 = tpu.matmul %254, %257, %cst_113 {dimension_numbers = #tpu.dot_dimension_numbers<[1], [0], [0], [1], [0, 0, 1, 1], [], []>} : vector<16x8xf32>, vector<8x32xf32>, vector<16x32xf32> -> vector<16x32xf32>
    %259 = arith.addf %234, %258 : vector<16x32xf32>
    %260 = vector.extract_strided_slice %204 {offsets = [0, 0, 16], sizes = [2, 8, 8], strides = [1, 1, 1]} : vector<2x8x32xf32> to vector<2x8x8xf32>
    %261 = vector.extract_strided_slice %206 {offsets = [0, 0, 16], sizes = [2, 8, 8], strides = [1, 1, 1]} : vector<2x8x32xf32> to vector<2x8x8xf32>
    %262 = vector.extract_strided_slice %208 {offsets = [0, 0, 16], sizes = [2, 8, 8], strides = [1, 1, 1]} : vector<2x8x32xf32> to vector<2x8x8xf32>
    "tpu.trace_start"() <{level = 10 : i32, message = "bqd,bkd->bqk"}> : () -> ()
    %cst_114 = arith.constant dense<0.000000e+00> : vector<2x8x8xf32>
    %263 = tpu.matmul %260, %261, %cst_114 {dimension_numbers = #tpu.dot_dimension_numbers<[2], [2], [1], [1], [0, 0, 0, 1, 1, 1], [0], [0]>} : vector<2x8x8xf32>, vector<2x8x8xf32>, vector<2x8x8xf32> -> vector<2x8x8xf32>
    "tpu.trace_stop"() : () -> ()
    %cst_115 = arith.constant 0.353553385 : f32
    %264 = vector.broadcast %cst_115 : f32 to vector<2x8x8xf32>
    %265 = arith.mulf %263, %264 : vector<2x8x8xf32>
    %266 = vector.broadcast %5 : vector<2x1x8xf32> to vector<2x8x8xf32>
    %267 = arith.addf %265, %266 : vector<2x8x8xf32>
    %cst_116 = arith.constant dense<0xFF800000> : vector<2x8xf32>
    %268 = vector.multi_reduction <maximumf>, %267, %cst_116 [2] : vector<2x8x8xf32> to vector<2x8xf32>
    %269 = vector.shape_cast %268 : vector<2x8xf32> to vector<2x8x1xf32>
    %270 = vector.broadcast %269 : vector<2x8x1xf32> to vector<2x8x8xf32>
    %271 = arith.subf %267, %270 : vector<2x8x8xf32>
    %272 = math.exp %271 : vector<2x8x8xf32>
    %cst_117 = arith.constant dense<0.000000e+00> : vector<2x8xf32>
    %273 = vector.multi_reduction <add>, %272, %cst_117 [2] : vector<2x8x8xf32> to vector<2x8xf32>
    %274 = vector.shape_cast %273 : vector<2x8xf32> to vector<2x8x1xf32>
    %275 = tpu.reciprocal %274 {approx = true} : vector<2x8x1xf32> -> vector<2x8x1xf32>
    %276 = vector.broadcast %275 : vector<2x8x1xf32> to vector<2x8x8xf32>
    %277 = arith.mulf %272, %276 : vector<2x8x8xf32>
    "tpu.trace_start"() <{level = 10 : i32, message = "bqk,bkd->bqd"}> : () -> ()
    %cst_118 = arith.constant dense<0.000000e+00> : vector<2x8x8xf32>
    %278 = tpu.matmul %277, %262, %cst_118 {dimension_numbers = #tpu.dot_dimension_numbers<[2], [1], [1], [2], [0, 0, 0, 1, 1, 2], [0], [0]>} : vector<2x8x8xf32>, vector<2x8x8xf32>, vector<2x8x8xf32> -> vector<2x8x8xf32>
    "tpu.trace_stop"() : () -> ()
    %279 = vector.shape_cast %278 : vector<2x8x8xf32> to vector<16x8xf32>
    %c1_119 = arith.constant 1 : index
    %c0_120 = arith.constant 0 : index
    %c0_121 = arith.constant 0 : index
    %280 = vector.load %arg5[%c1_119, %c0_120, %c0_121] : memref<2x32x32xf32, #tpu.memory_space<vmem>>, vector<1x32x32xf32>
    %281 = vector.shape_cast %280 : vector<1x32x32xf32> to vector<32x32xf32>
    %282 = vector.extract_strided_slice %281 {offsets = [16, 0], sizes = [8, 32], strides = [1, 1]} : vector<32x32xf32> to vector<8x32xf32>
    %cst_122 = arith.constant dense<0.000000e+00> : vector<16x32xf32>
    %283 = tpu.matmul %279, %282, %cst_122 {dimension_numbers = #tpu.dot_dimension_numbers<[1], [0], [0], [1], [0, 0, 1, 1], [], []>} : vector<16x8xf32>, vector<8x32xf32>, vector<16x32xf32> -> vector<16x32xf32>
    %284 = arith.addf %259, %283 : vector<16x32xf32>
    %285 = vector.extract_strided_slice %204 {offsets = [0, 0, 24], sizes = [2, 8, 8], strides = [1, 1, 1]} : vector<2x8x32xf32> to vector<2x8x8xf32>
    %286 = vector.extract_strided_slice %206 {offsets = [0, 0, 24], sizes = [2, 8, 8], strides = [1, 1, 1]} : vector<2x8x32xf32> to vector<2x8x8xf32>
    %287 = vector.extract_strided_slice %208 {offsets = [0, 0, 24], sizes = [2, 8, 8], strides = [1, 1, 1]} : vector<2x8x32xf32> to vector<2x8x8xf32>
    "tpu.trace_start"() <{level = 10 : i32, message = "bqd,bkd->bqk"}> : () -> ()
    %cst_123 = arith.constant dense<0.000000e+00> : vector<2x8x8xf32>
    %288 = tpu.matmul %285, %286, %cst_123 {dimension_numbers = #tpu.dot_dimension_numbers<[2], [2], [1], [1], [0, 0, 0, 1, 1, 1], [0], [0]>} : vector<2x8x8xf32>, vector<2x8x8xf32>, vector<2x8x8xf32> -> vector<2x8x8xf32>
    "tpu.trace_stop"() : () -> ()
    %cst_124 = arith.constant 0.353553385 : f32
    %289 = vector.broadcast %cst_124 : f32 to vector<2x8x8xf32>
    %290 = arith.mulf %288, %289 : vector<2x8x8xf32>
    %291 = vector.broadcast %5 : vector<2x1x8xf32> to vector<2x8x8xf32>
    %292 = arith.addf %290, %291 : vector<2x8x8xf32>
    %cst_125 = arith.constant dense<0xFF800000> : vector<2x8xf32>
    %293 = vector.multi_reduction <maximumf>, %292, %cst_125 [2] : vector<2x8x8xf32> to vector<2x8xf32>
    %294 = vector.shape_cast %293 : vector<2x8xf32> to vector<2x8x1xf32>
    %295 = vector.broadcast %294 : vector<2x8x1xf32> to vector<2x8x8xf32>
    %296 = arith.subf %292, %295 : vector<2x8x8xf32>
    %297 = math.exp %296 : vector<2x8x8xf32>
    %cst_126 = arith.constant dense<0.000000e+00> : vector<2x8xf32>
    %298 = vector.multi_reduction <add>, %297, %cst_126 [2] : vector<2x8x8xf32> to vector<2x8xf32>
    %299 = vector.shape_cast %298 : vector<2x8xf32> to vector<2x8x1xf32>
    %300 = tpu.reciprocal %299 {approx = true} : vector<2x8x1xf32> -> vector<2x8x1xf32>
    %301 = vector.broadcast %300 : vector<2x8x1xf32> to vector<2x8x8xf32>
    %302 = arith.mulf %297, %301 : vector<2x8x8xf32>
    "tpu.trace_start"() <{level = 10 : i32, message = "bqk,bkd->bqd"}> : () -> ()
    %cst_127 = arith.constant dense<0.000000e+00> : vector<2x8x8xf32>
    %303 = tpu.matmul %302, %287, %cst_127 {dimension_numbers = #tpu.dot_dimension_numbers<[2], [1], [1], [2], [0, 0, 0, 1, 1, 2], [0], [0]>} : vector<2x8x8xf32>, vector<2x8x8xf32>, vector<2x8x8xf32> -> vector<2x8x8xf32>
    "tpu.trace_stop"() : () -> ()
    %304 = vector.shape_cast %303 : vector<2x8x8xf32> to vector<16x8xf32>
    %c1_128 = arith.constant 1 : index
    %c0_129 = arith.constant 0 : index
    %c0_130 = arith.constant 0 : index
    %305 = vector.load %arg5[%c1_128, %c0_129, %c0_130] : memref<2x32x32xf32, #tpu.memory_space<vmem>>, vector<1x32x32xf32>
    %306 = vector.shape_cast %305 : vector<1x32x32xf32> to vector<32x32xf32>
    %307 = vector.extract_strided_slice %306 {offsets = [24, 0], sizes = [8, 32], strides = [1, 1]} : vector<32x32xf32> to vector<8x32xf32>
    %cst_131 = arith.constant dense<0.000000e+00> : vector<16x32xf32>
    %308 = tpu.matmul %304, %307, %cst_131 {dimension_numbers = #tpu.dot_dimension_numbers<[1], [0], [0], [1], [0, 0, 1, 1], [], []>} : vector<16x8xf32>, vector<8x32xf32>, vector<16x32xf32> -> vector<16x32xf32>
    %309 = arith.addf %284, %308 : vector<16x32xf32>
    %c1_132 = arith.constant 1 : index
    %c0_133 = arith.constant 0 : index
    %c0_134 = arith.constant 0 : index
    %310 = vector.load %arg6[%c1_132, %c0_133, %c0_134] : memref<2x1x32xf32, #tpu.memory_space<vmem>>, vector<1x1x32xf32>
    %311 = vector.shape_cast %310 : vector<1x1x32xf32> to vector<1x32xf32>
    %312 = vector.broadcast %311 : vector<1x32xf32> to vector<16x32xf32>
    %313 = arith.addf %309, %312 : vector<16x32xf32>
    %314 = arith.addf %195, %313 : vector<16x32xf32>
    %cst_135 = arith.constant dense<0.000000e+00> : vector<16xf32>
    %315 = vector.multi_reduction <add>, %314, %cst_135 [1] : vector<16x32xf32> to vector<16xf32>
    %316 = vector.shape_cast %315 : vector<16xf32> to vector<16x1xf32>
    %cst_136 = arith.constant 3.200000e+01 : f32
    %317 = vector.broadcast %cst_136 : f32 to vector<16x1xf32>
    %318 = arith.divf %316, %317 : vector<16x1xf32>
    %319 = vector.broadcast %318 : vector<16x1xf32> to vector<16x32xf32>
    %320 = arith.subf %314, %319 : vector<16x32xf32>
    %321 = arith.mulf %320, %320 : vector<16x32xf32>
    %cst_137 = arith.constant dense<0.000000e+00> : vector<16xf32>
    %322 = vector.multi_reduction <add>, %321, %cst_137 [1] : vector<16x32xf32> to vector<16xf32>
    %323 = vector.shape_cast %322 : vector<16xf32> to vector<16x1xf32>
    %cst_138 = arith.constant 3.200000e+01 : f32
    %324 = vector.broadcast %cst_138 : f32 to vector<16x1xf32>
    %325 = arith.divf %323, %324 : vector<16x1xf32>
    %326 = vector.broadcast %318 : vector<16x1xf32> to vector<16x32xf32>
    %327 = arith.subf %314, %326 : vector<16x32xf32>
    %cst_139 = arith.constant 9.99999974E-6 : f32
    %328 = vector.broadcast %cst_139 : f32 to vector<16x1xf32>
    %329 = arith.addf %325, %328 : vector<16x1xf32>
    %330 = math.rsqrt %329 : vector<16x1xf32>
    %331 = vector.broadcast %330 : vector<16x1xf32> to vector<16x32xf32>
    %332 = arith.mulf %327, %331 : vector<16x32xf32>
    %c1_140 = arith.constant 1 : index
    %c0_141 = arith.constant 0 : index
    %c0_142 = arith.constant 0 : index
    %333 = vector.load %arg7[%c1_140, %c0_141, %c0_142] : memref<2x1x32xf32, #tpu.memory_space<vmem>>, vector<1x1x32xf32>
    %334 = vector.shape_cast %333 : vector<1x1x32xf32> to vector<1x32xf32>
    %335 = vector.broadcast %334 : vector<1x32xf32> to vector<16x32xf32>
    %336 = arith.mulf %332, %335 : vector<16x32xf32>
    %c1_143 = arith.constant 1 : index
    %c0_144 = arith.constant 0 : index
    %c0_145 = arith.constant 0 : index
    %337 = vector.load %arg8[%c1_143, %c0_144, %c0_145] : memref<2x1x32xf32, #tpu.memory_space<vmem>>, vector<1x1x32xf32>
    %338 = vector.shape_cast %337 : vector<1x1x32xf32> to vector<1x32xf32>
    %339 = vector.broadcast %338 : vector<1x32xf32> to vector<16x32xf32>
    %340 = arith.addf %336, %339 : vector<16x32xf32>
    %c1_146 = arith.constant 1 : index
    %c0_147 = arith.constant 0 : index
    %c0_148 = arith.constant 0 : index
    %341 = vector.load %arg9[%c1_146, %c0_147, %c0_148] : memref<2x32x64xf32, #tpu.memory_space<vmem>>, vector<1x32x64xf32>
    %342 = vector.shape_cast %341 : vector<1x32x64xf32> to vector<32x64xf32>
    %cst_149 = arith.constant dense<0.000000e+00> : vector<16x64xf32>
    %343 = tpu.matmul %340, %342, %cst_149 {dimension_numbers = #tpu.dot_dimension_numbers<[1], [0], [0], [1], [0, 0, 1, 1], [], []>} : vector<16x32xf32>, vector<32x64xf32>, vector<16x64xf32> -> vector<16x64xf32>
    %c1_150 = arith.constant 1 : index
    %c0_151 = arith.constant 0 : index
    %c0_152 = arith.constant 0 : index
    %344 = vector.load %arg10[%c1_150, %c0_151, %c0_152] : memref<2x1x64xf32, #tpu.memory_space<vmem>>, vector<1x1x64xf32>
    %345 = vector.shape_cast %344 : vector<1x1x64xf32> to vector<1x64xf32>
    %346 = vector.broadcast %345 : vector<1x64xf32> to vector<16x64xf32>
    %347 = arith.addf %343, %346 : vector<16x64xf32>
    %cst_153 = arith.constant 0.000000e+00 : f32
    %348 = vector.broadcast %cst_153 : f32 to vector<16x64xf32>
    %349 = arith.maximumf %347, %348 : vector<16x64xf32>
    %c1_154 = arith.constant 1 : index
    %c0_155 = arith.constant 0 : index
    %c0_156 = arith.constant 0 : index
    %350 = vector.load %arg11[%c1_154, %c0_155, %c0_156] : memref<2x64x32xf32, #tpu.memory_space<vmem>>, vector<1x64x32xf32>
    %351 = vector.shape_cast %350 : vector<1x64x32xf32> to vector<64x32xf32>
    %cst_157 = arith.constant dense<0.000000e+00> : vector<16x32xf32>
    %352 = tpu.matmul %349, %351, %cst_157 {dimension_numbers = #tpu.dot_dimension_numbers<[1], [0], [0], [1], [0, 0, 1, 1], [], []>} : vector<16x64xf32>, vector<64x32xf32>, vector<16x32xf32> -> vector<16x32xf32>
    %c1_158 = arith.constant 1 : index
    %c0_159 = arith.constant 0 : index
    %c0_160 = arith.constant 0 : index
    %353 = vector.load %arg12[%c1_158, %c0_159, %c0_160] : memref<2x1x32xf32, #tpu.memory_space<vmem>>, vector<1x1x32xf32>
    %354 = vector.shape_cast %353 : vector<1x1x32xf32> to vector<1x32xf32>
    %355 = vector.broadcast %354 : vector<1x32xf32> to vector<16x32xf32>
    %356 = arith.addf %352, %355 : vector<16x32xf32>
    %357 = arith.addf %340, %356 : vector<16x32xf32>
    %cst_161 = arith.constant dense<0.000000e+00> : vector<16xf32>
    %358 = vector.multi_reduction <add>, %357, %cst_161 [1] : vector<16x32xf32> to vector<16xf32>
    %359 = vector.shape_cast %358 : vector<16xf32> to vector<16x1xf32>
    %cst_162 = arith.constant 3.200000e+01 : f32
    %360 = vector.broadcast %cst_162 : f32 to vector<16x1xf32>
    %361 = arith.divf %359, %360 : vector<16x1xf32>
    %362 = vector.broadcast %361 : vector<16x1xf32> to vector<16x32xf32>
    %363 = arith.subf %357, %362 : vector<16x32xf32>
    %364 = arith.mulf %363, %363 : vector<16x32xf32>
    %cst_163 = arith.constant dense<0.000000e+00> : vector<16xf32>
    %365 = vector.multi_reduction <add>, %364, %cst_163 [1] : vector<16x32xf32> to vector<16xf32>
    %366 = vector.shape_cast %365 : vector<16xf32> to vector<16x1xf32>
    %cst_164 = arith.constant 3.200000e+01 : f32
    %367 = vector.broadcast %cst_164 : f32 to vector<16x1xf32>
    %368 = arith.divf %366, %367 : vector<16x1xf32>
    %369 = vector.broadcast %361 : vector<16x1xf32> to vector<16x32xf32>
    %370 = arith.subf %357, %369 : vector<16x32xf32>
    %cst_165 = arith.constant 9.99999974E-6 : f32
    %371 = vector.broadcast %cst_165 : f32 to vector<16x1xf32>
    %372 = arith.addf %368, %371 : vector<16x1xf32>
    %373 = math.rsqrt %372 : vector<16x1xf32>
    %374 = vector.broadcast %373 : vector<16x1xf32> to vector<16x32xf32>
    %375 = arith.mulf %370, %374 : vector<16x32xf32>
    %c1_166 = arith.constant 1 : index
    %c0_167 = arith.constant 0 : index
    %c0_168 = arith.constant 0 : index
    %376 = vector.load %arg13[%c1_166, %c0_167, %c0_168] : memref<2x1x32xf32, #tpu.memory_space<vmem>>, vector<1x1x32xf32>
    %377 = vector.shape_cast %376 : vector<1x1x32xf32> to vector<1x32xf32>
    %378 = vector.broadcast %377 : vector<1x32xf32> to vector<16x32xf32>
    %379 = arith.mulf %375, %378 : vector<16x32xf32>
    %c1_169 = arith.constant 1 : index
    %c0_170 = arith.constant 0 : index
    %c0_171 = arith.constant 0 : index
    %380 = vector.load %arg14[%c1_169, %c0_170, %c0_171] : memref<2x1x32xf32, #tpu.memory_space<vmem>>, vector<1x1x32xf32>
    %381 = vector.shape_cast %380 : vector<1x1x32xf32> to vector<1x32xf32>
    %382 = vector.broadcast %381 : vector<1x32xf32> to vector<16x32xf32>
    %383 = arith.addf %379, %382 : vector<16x32xf32>
    %384 = arith.addf %383, %195 : vector<16x32xf32>
    %385 = vector.shape_cast %384 : vector<16x32xf32> to vector<2x8x32xf32>
    %386 = vector.shape_cast %0 : vector<2x8xf32> to vector<2x1x8xf32>
    "tpu.trace_start"() <{level = 10 : i32, message = "bqs,bsd->bqd"}> : () -> ()
    %cst_172 = arith.constant dense<0.000000e+00> : vector<2x1x32xf32>
    %387 = tpu.matmul %386, %385, %cst_172 {dimension_numbers = #tpu.dot_dimension_numbers<[2], [1], [1], [2], [0, 0, 0, 1, 1, 2], [0], [0]>} : vector<2x1x8xf32>, vector<2x8x32xf32>, vector<2x1x32xf32> -> vector<2x1x32xf32>
    "tpu.trace_stop"() : () -> ()
    %388 = vector.shape_cast %387 : vector<2x1x32xf32> to vector<2x32xf32>
    %c0_173 = arith.constant 0 : index
    %c0_174 = arith.constant 0 : index
    %389 = vector.load %arg2[%c0_173, %c0_174] : memref<2x1xf32, #tpu.memory_space<vmem>>, vector<2x1xf32>
    %cst_175 = arith.constant 1.000000e+00 : f32
    %390 = vector.broadcast %cst_175 : f32 to vector<2x1xf32>
    %391 = arith.maximumf %389, %390 : vector<2x1xf32>
    %392 = vector.broadcast %391 : vector<2x1xf32> to vector<2x32xf32>
    %393 = arith.divf %388, %392 : vector<2x32xf32>
    %c0_176 = arith.constant 0 : index
    %c0_177 = arith.constant 0 : index
    %394 = vector.load %arg15[%c0_176, %c0_177] : memref<2x32xf32, #tpu.memory_space<vmem>>, vector<2x32xf32>
    tpu.vector_store %arg15[%c0_176, %c0_177], %393 {strides = array<i32>} : memref<2x32xf32, #tpu.memory_space<vmem>>, vector<2x32xf32>,
    return
  }
}

</mosaic_0001>

<bundles_post_ra>
// kernel: tpu_custom_call.1
= control target key start
LH: loop header
LB: loop body
LE: loop exit
PB: predicated region body
PF: predicated region fallthrough
CT: control target
= control target key end

     0   :  { %20 = vsyncpa [#allocation3], 0  ;;  %s5802_s0 = inlined_call_operand.hbm [shape: f32[2,8,32], index: 0, kind: input, shape index: {}]   ;;  %s5803_s1 = inlined_call_operand.vmem [shape: f32[2,8], index: 1, kind: input, shape index: {}]   ;;  %s5804_s2 = inlined_call_operand.vmem [shape: f32[2,1], index: 2, kind: input, shape index: {}]   ;;  %s5805_s3 = inlined_call_operand.vmem [shape: f32[2,32,96], index: 3, kind: input, shape index: {}]   ;;  %s5806_s4 = inlined_call_operand.vmem [shape: f32[2,1,96], index: 4, kind: input, shape index: {}]   ;;  %s5807_s5 = inlined_call_operand.vmem [shape: f32[2,32,32], index: 5, kind: input, shape index: {}]   ;;  %s5808_s6 = inlined_call_operand.vmem [shape: f32[2,1,32], index: 6, kind: input, shape index: {}]   ;;  %s5809_s7 = inlined_call_operand.vmem [shape: f32[2,1,32], index: 7, kind: input, shape index: {}]   ;;  %s5810_s8 = inlined_call_operand.vmem [shape: f32[2,1,32], index: 8, kind: input, shape index: {}]   ;;  %s5811_s9 = inlined_call_operand.vmem [shape: f32[2,32,64], index: 9, kind: input, shape index: {}]   ;;  %s5812_s10 = inlined_call_operand.vmem [shape: f32[2,1,64], index: 10, kind: input, shape index: {}]   ;;  %s5813_s11 = inlined_call_operand.vmem [shape: f32[2,64,32], index: 11, kind: input, shape index: {}]   ;;  %s5814_s12 = inlined_call_operand.vmem [shape: f32[2,1,32], index: 12, kind: input, shape index: {}]   ;;  %s5815_s13 = inlined_call_operand.vmem [shape: f32[2,1,32], index: 13, kind: input, shape index: {}]   ;;  %s5816_s14 = inlined_call_operand.vmem [shape: f32[2,1,32], index: 14, kind: input, shape index: {}]   ;;  %s5817_s15 = inlined_call_operand.hbm [shape: f32[2,32], index: 15, kind: output, shape index: {}]  }
   0x1   :  { %21 = vsyncpa [#allocation4], 0  ;;  %s5123_s18 = smov [#allocation2]  }
   0x2   :  { %s27_s19 = sshll.u32 %s5123_s18, 4  ;;  %s28_s19 = int_to_ptr.vmem [resolvable:$true] %s27_s19 }
   0x3   :  { %s5087_s20 = scalar_lea.vmem %s28_s19, 256  ;;  %p5092_p1 = scmp.lt.s32.totalorder %s28_s19, %s28_s19 }
   0x4   :  { %p5088_p0 = scmp.ne.s32.totalorder %s28_s19, %s5087_s20  ;;  %p5093_p2 = scmp.lt.s32.totalorder %s5087_s20, %s5087_s20 }
   0x6   :  { %p5094_p3 = por %p5093_p2, %p5092_p1 }
   0x8   :  { %p5095_p4 = pnand %p5094_p3, %p5088_p0 }
   0xa   :  { %5098 = shalt.err (!%p5095_p4)
}
   0xb   :  { %s5124_s21 = smov 128   ;;  %s5125_s22 = smov 8  }
   0xc   :  { %33 = dma.hbm_to_vmem [thread:$0]  %s5802_s0, 256, %s28_s19, [#allocation3], %s5124_s21, %s5124_s21, %s5125_s22  }
   0xd   :  { %5119 = dma.done.wait [#allocation3], 256  }
   0xe   :  { %5120 = vsyncadd [#allocation3], 4294967040  ;;  %vm104_vm0 = vcmask 261120   ;;  %v96_v0 = vld [vmem:[%s5805_s3 + $0x18] sm:$0xff]  ;;  %v95_v1 = vld [vmem:[%s5805_s3 + $0x10] sm:$0xff]  ;;  %v5126_v6 = vmov 0.0   ;;  %v72_v16 = vlaneseq }
   0xf   :  { %4680 = vmatprep.subr.mxu0 %v96_v0  ;;  %v5231_v2 = vld [vmem:[#allocation2] sm:$0xff]  ;;  %v94_v3 = vld [vmem:[%s5805_s3 + $0x8] sm:$0xff]  ;;  %4691 = vmatprep.subr.mxu1 %v5126_v6  ;;  %vm5127_vm1 = vmmov 0   ;;  %s5128_s19 = smov 96   ;;  %vm189_vm2 = vcmask 64512   ;;  %s5130_s22 = smov 64  }
  0x10   :  { %4681 = vmatpush3.msra.mxu0 %v96_v0  ;;  %4688 = vmatprep.mubr.msk.f32.mxu0 %vm104_vm0, %v5231_v2  ;;  %v93_v4 = vld [vmem:[%s5805_s3] sm:$0xff]  ;;  %v5241_v5 = vld [vmem:[#allocation2 + $0x8] sm:$0xff]  ;;  %v5129_v14 = vmov 1966171168   ;;  %v73_v20 = vshrl.u32 %v72_v16, 7  ;;  %s5131_s23 = smov 88  }
  0x11   :  { %4682 = vmatprep.subr.mxu0 %v95_v1  ;;  %4693 = vmatprep.mubr.msk.f32.mxu1 %vm5127_vm1, %v5126_v6  ;;  %v4422_v8 = vld [vmem:[%s5806_s4] ss:$0 sm:$0xff]  ;;  %v70_v15 = vunpack.c.l.s4 %v5129_v14  ;;  %s5132_s24 = smov 120   ;;  %s5133_s25 = smov 56   ;;  %vm2028_vm3 = vcmask 523264   ;;  %vm4402_vm4 = vcmask 1041409  }
  0x12   :  { %4683 = vmatpush3.msra.mxu0 %v95_v1  ;;  %v65_v17 = vld [vmem:[%s5803_s1] sm:$0x3]  ;;  %v345_v25 = vsub.s32 0, %v73_v20  ;;  %s5134_s26 = smov 112   ;;  %s5135_s27 = smov 80   ;;  %vm4405_vm5 = vcmask 254976  }
  0x13   :  { %4684 = vmatprep.subr.mxu0 %v94_v3  ;;  %v66_v18 = vsub.f32 1.0, %v65_v17  ;;  %v71_v19 = vunpack.c.0.s8 %v70_v15  ;;  %s5136_s16 = smov 48   ;;  %s5822_s17 = smov 72  }
  0x14   :  { %4685 = vmatpush3.msra.mxu0 %v94_v3  ;;  %s5820_s18 = smov 104   ;;  %s5818_s28 = smov 40  }
  0x15   :  { %4686 = vmatprep.subr.mxu0 %v93_v4  ;;  %v67_v21 = vmul.f32 -1e+09, %v66_v18  ;;  %v5277_v22 = vsub.s32 %v71_v19, %v73_v20 }
  0x16   :  { %4687 = vmatpush3.msra.mxu0 %v93_v4 }
  0x17   :  { %4689 = vmatmul.mubr.msk.f32.vlgmr.msra.gmra.mxu0 %vm104_vm0, %v5241_v5  ;;  %4701 = vmatprep.subr.mxu0 %v5126_v6  ;;  %v75_v23 = vrot.slane %v67_v21, %v5277_v22 }
  0x18   :  { %4703 = vmatprep.mubr.msk.f32.mxu0 %vm5127_vm1, %v5126_v6 }
  0x19   :  { %v83_v24 = vrot.slane %v75_v23, %v5277_v22  ;;  %v76_v26 = vcombine.high %v75_v23, %v75_v23 }
  0x1b   :  { %v5281_v27 = vrot.slane %v83_v24, %v345_v25  ;;  %v90_v28 = vrot.slane %v76_v26, %v5277_v22 }
  0x1d   :  { %v5285_v33 = vrot.slane %v90_v28, %v345_v25 }
  0xd7   :  { %v4690_v7 = vpop.f32.mrf.mxu0 }
  0xd8   :  { %v5258_v11 = vadd.f32 %v4690_v7, %v4422_v8 }
  0xd9   :  { %v177_v9 = vpop.f32.mrf.mxu0 }
  0xda   :  { %v5254_v10 = vadd.f32 %v4422_v8, %v177_v9 }
  0xdc   :  { %187 = vrot.lane.b32.xlu0 %v5254_v10, %s5128_s19 }
  0xe0   :  { %265 = vrot.lane.b32.xlu0 %v5258_v11, %s5128_s19 }
 0x14e   :  { %v188_v12 = vpop.permute.xlu0 %187 }
 0x14f   :  { %4692 = vmatpush3.xpose.msk.msra.mxu1 %vm189_vm2, %v188_v12 }
 0x150   :  { %4696 = vmatprep.subr.mxu1 %v5126_v6 }
 0x152   :  { %4694 = vmatmul.mubr.msk.f32.vlgmr.msra.gmra.mxu1 %vm189_vm2, %v5254_v10  ;;  %v266_v13 = vpop.permute.xlu0 %265 }
 0x153   :  { %4697 = vmatpush3.xpose.msk.msra.mxu1 %vm189_vm2, %v266_v13  ;;  %4698 = vmatprep.mubr.msk.f32.mxu1 %vm5127_vm1, %v5126_v6 }
 0x154   :  { %4706 = vmatprep.subr.mxu1 %v5126_v6 }
 0x156   :  { %4699 = vmatmul.mubr.msk.f32.vlgmr.msra.gmra.mxu1 %vm189_vm2, %v5258_v11 }
 0x157   :  { %4708 = vmatprep.mubr.msk.f32.mxu1 %vm5127_vm1, %v5126_v6 }
 0x212   :  { %v260_v29 = vpop.f32.mrf.mxu1 }
 0x213   :  { %v341_v30 = vmul.f32 0.35355338, %v260_v29 }
 0x214   :  { %v4695_v31 = vpop.f32.mrf.mxu1 }
 0x215   :  { %v353_v32 = vadd.f32 %v5281_v27, %v341_v30  ;;  %v529_v30 = vld [vmem:[%s5807_s5] sm:$0xff] }
 0x216   :  { %v337_v34 = vpop.f32.mrf.mxu1 }
 0x217   :  { %v342_v35 = vmul.f32 0.35355338, %v337_v34  ;;  %v355_v36 = vsel %vm189_vm2, %v353_v32, -inf }
 0x218   :  { %v4700_v37 = vpop.f32.mrf.mxu1  ;;  %356 = vmax.xlane.f32.xlu1 %v355_v36 }
 0x219   :  { %v354_v38 = vadd.f32 %v5285_v33, %v342_v35 }
 0x21b   :  { %v358_v39 = vsel %vm189_vm2, %v354_v38, -inf }
 0x21c   :  { %359 = vmax.xlane.f32.xlu1 %v358_v39 }
 0x22d   :  { %377 = vrot.lane.b32.xlu1 %v5254_v10, %s5130_s22 }
 0x231   :  { %453 = vrot.lane.b32.xlu1 %v5258_v11, %s5130_s22 }
 0x235   :  { %532 = vrot.lane.b32.xlu1 %v5254_v10, %s5131_s23 }
 0x239   :  { %610 = vrot.lane.b32.xlu1 %v5258_v11, %s5131_s23 }
 0x2a1   :  { %v357_v40 = vpop.xlane.xlu1 %356 }
 0x2a2   :  { %v361_v41 = vsub.f32 %v353_v32, %v357_v40 }
 0x2a4   :  { %v363_v42 = vmul.f32 1.442695, %v361_v41 }
 0x2a5   :  { %v360_v43 = vpop.xlane.xlu1 %359 }
 0x2a6   :  { %4993 = vpow2.f32 %v363_v42  ;;  %v362_v44 = vsub.f32 %v354_v38, %v360_v43  ;;  %v864_v42 = vld [vmem:[%s5807_s5 + $0x8] sm:$0xff] }
 0x2a8   :  { %v365_v45 = vmul.f32 1.442695, %v362_v44 }
 0x2a9   :  { %v378_v46 = vpop.permute.xlu1 %377 }
 0x2aa   :  { %4995 = vpow2.f32 %v365_v45  ;;  %4702 = vmatpush3.msra.mxu0 %v378_v46 }
 0x2ab   :  { %4711 = vmatprep.subr.mxu0 %v5126_v6 }
 0x2ad   :  { %v454_v47 = vpop.permute.xlu1 %453 }
 0x2ae   :  { %4707 = vmatpush3.msra.mxu1 %v454_v47 }
 0x2af   :  { %4716 = vmatprep.subr.mxu1 %v5126_v6 }
 0x2b1   :  { %v533_v52 = vpop.permute.xlu1 %532 }
 0x2b3   :  { %v4994_v48 = vpop.eup %4993 }
 0x2b4   :  { %v367_v49 = vsel %vm189_vm2, %v4994_v48, 0.0 }
 0x2b5   :  { %368 = vadd.xlane.f32.xlu0 %v367_v49  ;;  %v611_v53 = vpop.permute.xlu1 %610 }
 0x2b7   :  { %v4996_v50 = vpop.eup %4995 }
 0x2b8   :  { %v370_v51 = vsel %vm189_vm2, %v4996_v50, 0.0 }
 0x2b9   :  { %371 = vadd.xlane.f32.xlu1 %v370_v51 }
 0x2ca   :  { %608 = vrot.lane.b32.xlu1 %v5258_v11, %s5132_s24 }
 0x2cb   :  { %530 = vrot.lane.b32.xlu0 %v5254_v10, %s5132_s24 }
 0x33e   :  { %v369_v54 = vpop.xlane.xlu0 %368 }
 0x33f   :  { %4997 = vrcp.f32 %v369_v54 }
 0x342   :  { %v372_v55 = vpop.xlane.xlu1 %371  ;;  %v531_v60 = vpop.permute.xlu0 %530 }
 0x343   :  { %4999 = vrcp.f32 %v372_v55 }
 0x346   :  { %v609_v61 = vpop.permute.xlu1 %608 }
 0x34c   :  { %v4998_v56 = vpop.eup %4997 }
 0x34d   :  { %v375_v57 = vmul.f32 %v4998_v56, %v4994_v48 }
 0x34f   :  { %4704 = vmatmul.mubr.msk.f32.vlgmr.msra.gmra.mxu0 %vm189_vm2, %v375_v57 }
 0x350   :  { %v5000_v58 = vpop.eup %4999  ;;  %4712 = vmatpush3.xpose.msk.msra.mxu0 %vm189_vm2, %v533_v52  ;;  %4713 = vmatprep.mubr.msk.f32.mxu0 %vm5127_vm1, %v5126_v6 }
 0x351   :  { %v376_v59 = vmul.f32 %v5000_v58, %v4996_v50  ;;  %4721 = vmatprep.subr.mxu0 %v5126_v6 }
 0x353   :  { %4709 = vmatmul.mubr.msk.f32.vlgmr.msra.gmra.mxu1 %vm189_vm2, %v376_v59  ;;  %4714 = vmatmul.mubr.msk.f32.vlgmr.msra.gmra.mxu0 %vm189_vm2, %v531_v60 }
 0x354   :  { %4717 = vmatpush3.xpose.msk.msra.mxu1 %vm189_vm2, %v611_v53  ;;  %4718 = vmatprep.mubr.msk.f32.mxu1 %vm5127_vm1, %v5126_v6 }
 0x355   :  { %4726 = vmatprep.subr.mxu1 %v5126_v6  ;;  %4723 = vmatprep.mubr.msk.f32.mxu0 %vm5127_vm1, %v5126_v6 }
 0x357   :  { %4719 = vmatmul.mubr.msk.f32.vlgmr.msra.gmra.mxu1 %vm189_vm2, %v609_v61 }
 0x358   :  { %4728 = vmatprep.mubr.msk.f32.mxu1 %vm5127_vm1, %v5126_v6 }
 0x40f   :  { %v449_v62 = vpop.f32.mrf.mxu0 }
 0x411   :  { %v4705_v63 = vpop.f32.mrf.mxu0 }
 0x413   :  { %v525_v0 = vpop.f32.mrf.mxu1  ;;  %v604_v1 = vpop.f32.mrf.mxu0 }
 0x414   :  { %v686_v3 = vmul.f32 0.35355338, %v604_v1 }
 0x415   :  { %v4710_v4 = vpop.f32.mrf.mxu1  ;;  %v4715_v7 = vpop.f32.mrf.mxu0 }
 0x416   :  { %v688_v8 = vadd.f32 %v686_v3, %v5281_v27 }
 0x417   :  { %v682_v9 = vpop.f32.mrf.mxu1 }
 0x418   :  { %v687_v12 = vmul.f32 0.35355338, %v682_v9  ;;  %v690_v13 = vsel %vm189_vm2, %v688_v8, -inf }
 0x419   :  { %691 = vmax.xlane.f32.xlu1 %v690_v13  ;;  %v4720_v14 = vpop.f32.mrf.mxu1 }
 0x41a   :  { %v689_v15 = vadd.f32 %v687_v12, %v5285_v33 }
 0x41c   :  { %v693_v16 = vsel %vm189_vm2, %v689_v15, -inf }
 0x41d   :  { %694 = vmax.xlane.f32.xlu0 %v693_v16 }
 0x433   :  { %788 = vrot.lane.b32.xlu0 %v5258_v11, %s5133_s25 }
 0x437   :  { %1027 = vrot.lane.b32.xlu0 %v5254_v10, %s5134_s26 }
 0x4a2   :  { %v692_v17 = vpop.xlane.xlu1 %691 }
 0x4a3   :  { %v696_v18 = vsub.f32 %v688_v8, %v692_v17 }
 0x4a5   :  { %v698_v19 = vmul.f32 1.442695, %v696_v18 }
 0x4a6   :  { %v695_v20 = vpop.xlane.xlu0 %694 }
 0x4a7   :  { %5001 = vpow2.f32 %v698_v19  ;;  %v697_v21 = vsub.f32 %v689_v15, %v695_v20 }
 0x4a9   :  { %v700_v23 = vmul.f32 1.442695, %v697_v21 }
 0x4aa   :  { %v789_v24 = vpop.permute.xlu0 %788 }
 0x4ab   :  { %5003 = vpow2.f32 %v700_v23  ;;  %4727 = vmatpush3.msra.mxu1 %v789_v24  ;;  %v1361_v24 = vld [vmem:[%s5807_s5 + $0x10] sm:$0xff] }
 0x4ac   :  { %4736 = vmatprep.subr.mxu1 %v529_v30 }
 0x4ae   :  { %v1028_v47 = vpop.permute.xlu0 %1027 }
 0x4b4   :  { %v5002_v25 = vpop.eup %5001 }
 0x4b5   :  { %v702_v26 = vsel %vm189_vm2, %v5002_v25, 0.0 }
 0x4b6   :  { %703 = vadd.xlane.f32.xlu1 %v702_v26 }
 0x4b8   :  { %v5004_v28 = vpop.eup %5003 }
 0x4b9   :  { %v705_v29 = vsel %vm189_vm2, %v5004_v28, 0.0 }
 0x4ba   :  { %706 = vadd.xlane.f32.xlu1 %v705_v29 }
 0x4cb   :  { %712 = vrot.lane.b32.xlu1 %v5254_v10, %s5133_s25 }
 0x4cf   :  { %1029 = vrot.lane.b32.xlu1 %v5254_v10, %s5135_s27 }
 0x4d3   :  { %1107 = vrot.lane.b32.xlu1 %v5258_v11, %s5135_s27 }
 0x4d7   :  { %1105 = vrot.lane.b32.xlu1 %v5258_v11, %s5134_s26 }
 0x53f   :  { %v704_v31 = vpop.xlane.xlu1 %703 }
 0x540   :  { %5005 = vrcp.f32 %v704_v31 }
 0x543   :  { %v707_v32 = vpop.xlane.xlu1 %706 }
 0x544   :  { %5007 = vrcp.f32 %v707_v32 }
 0x547   :  { %v713_v34 = vpop.permute.xlu1 %712 }
 0x548   :  { %4722 = vmatpush3.msra.mxu0 %v713_v34 }
 0x549   :  { %4731 = vmatprep.subr.mxu0 %v864_v42 }
 0x54b   :  { %v1030_v37 = vpop.permute.xlu1 %1029 }
 0x54d   :  { %v5006_v35 = vpop.eup %5005 }
 0x54e   :  { %v710_v36 = vmul.f32 %v5006_v35, %v5002_v25 }
 0x54f   :  { %v1108_v40 = vpop.permute.xlu1 %1107 }
 0x550   :  { %4724 = vmatmul.mubr.msk.f32.vlgmr.msra.gmra.mxu0 %vm189_vm2, %v710_v36 }
 0x551   :  { %v5008_v38 = vpop.eup %5007  ;;  %4732 = vmatpush3.msra.mxu0 %v864_v42 }
 0x552   :  { %v711_v39 = vmul.f32 %v5008_v38, %v5004_v28  ;;  %4741 = vmatprep.subr.mxu0 %v5126_v6 }
 0x553   :  { %v1106_v41 = vpop.permute.xlu1 %1105 }
 0x554   :  { %4729 = vmatmul.mubr.msk.f32.vlgmr.msra.gmra.mxu1 %vm189_vm2, %v711_v39 }
 0x555   :  { %4738 = vmatprep.mubr.msk.f32.mxu1 %vm189_vm2, %v449_v62  ;;  %4737 = vmatpush3.msra.mxu1 %v529_v30 }
 0x556   :  { %4746 = vmatprep.subr.mxu1 %v5126_v6 }
 0x558   :  { %4739 = vmatmul.mubr.msk.f32.vlgmr.msra.gmra.mxu1 %vm189_vm2, %v525_v0 }
 0x559   :  { %4747 = vmatpush3.xpose.msk.msra.mxu1 %vm189_vm2, %v1108_v40  ;;  %4748 = vmatprep.mubr.msk.f32.mxu1 %vm5127_vm1, %v5126_v6 }
 0x55a   :  { %4756 = vmatprep.subr.mxu1 %v5126_v6 }
 0x55c   :  { %4749 = vmatmul.mubr.msk.f32.vlgmr.msra.gmra.mxu1 %vm189_vm2, %v1106_v41 }
 0x55d   :  { %4758 = vmatprep.mubr.msk.f32.mxu1 %vm5127_vm1, %v5126_v6 }
 0x610   :  { %v784_v43 = vpop.f32.mrf.mxu0 }
 0x611   :  { %4733 = vmatprep.mubr.msk.f32.mxu0 %vm189_vm2, %v784_v43 }
 0x612   :  { %v4725_v44 = vpop.f32.mrf.mxu0 }
 0x614   :  { %v860_v45 = vpop.f32.mrf.mxu1 }
 0x615   :  { %4734 = vmatmul.mubr.msk.f32.vlgmr.msra.gmra.mxu0 %vm189_vm2, %v860_v45 }
 0x616   :  { %4742 = vmatpush3.xpose.msk.msra.mxu0 %vm189_vm2, %v1030_v37  ;;  %v4730_v46 = vpop.f32.mrf.mxu1  ;;  %4743 = vmatprep.mubr.msk.f32.mxu0 %vm5127_vm1, %v5126_v6 }
 0x617   :  { %4751 = vmatprep.subr.mxu0 %v5126_v6 }
 0x618   :  { %v5365_v48 = vpop.f32.mrf.mxu1 }
 0x619   :  { %4744 = vmatmul.mubr.msk.f32.vlgmr.msra.gmra.mxu0 %vm189_vm2, %v1028_v47 }
 0x61a   :  { %v5368_v49 = vpop.f32.mrf.mxu1  ;;  %4753 = vmatprep.mubr.msk.f32.mxu0 %vm5127_vm1, %v5126_v6 }
 0x61c   :  { %v1179_v50 = vpop.f32.mrf.mxu1 }
 0x61d   :  { %v1184_v51 = vmul.f32 0.35355338, %v1179_v50 }
 0x61e   :  { %v4750_v52 = vpop.f32.mrf.mxu1 }
 0x61f   :  { %v1186_v53 = vadd.f32 %v1184_v51, %v5285_v33 }
 0x621   :  { %v1190_v54 = vsel %vm189_vm2, %v1186_v53, -inf }
 0x622   :  { %1191 = vmax.xlane.f32.xlu1 %v1190_v54 }
 0x633   :  { %1209 = vrot.lane.b32.xlu1 %v5254_v10, %s5136_s16 }
 0x637   :  { %1447 = vrot.lane.b32.xlu1 %v5254_v10, %s5822_s17 }
 0x63b   :  { %1525 = vrot.lane.b32.xlu1 %v5258_v11, %s5822_s17 }
 0x63f   :  { %1523 = vrot.lane.b32.xlu1 %v5258_v11, %s5820_s18 }
 0x6ab   :  { %v1192_v55 = vpop.xlane.xlu1 %1191 }
 0x6ac   :  { %v1194_v57 = vsub.f32 %v1186_v53, %v1192_v55 }
 0x6ae   :  { %v1197_v58 = vmul.f32 1.442695, %v1194_v57 }
 0x6af   :  { %v1210_v56 = vpop.permute.xlu1 %1209 }
 0x6b0   :  { %4752 = vmatpush3.msra.mxu0 %v1210_v56  ;;  %5009 = vpow2.f32 %v1197_v58 }
 0x6b1   :  { %4761 = vmatprep.subr.mxu0 %v1361_v24 }
 0x6b3   :  { %v1448_v19 = vpop.permute.xlu1 %1447 }
 0x6b7   :  { %v1526_v34 = vpop.permute.xlu1 %1525 }
 0x6bb   :  { %v1524_v37 = vpop.permute.xlu1 %1523 }
 0x6bd   :  { %v5010_v3 = vpop.eup %5009 }
 0x6be   :  { %v1202_v4 = vsel %vm189_vm2, %v5010_v3, 0.0 }
 0x6d5   :  { %v5382_v59 = vpop.f32.mrf.mxu0 }
 0x6d6   :  { %v1024_v43 = vadd.f32 %v5365_v48, %v5382_v59 }
 0x6d7   :  { %v5384_v60 = vpop.f32.mrf.mxu0 }
 0x6d8   :  { %v1019_v45 = vadd.f32 %v5368_v49, %v5384_v60 }
 0x6d9   :  { %v1101_v61 = vpop.f32.mrf.mxu0 }
 0x6da   :  { %v1183_v62 = vmul.f32 0.35355338, %v1101_v61 }
 0x6db   :  { %v4745_v63 = vpop.f32.mrf.mxu0 }
 0x6dc   :  { %v1185_v0 = vadd.f32 %v1183_v62, %v5281_v27 }
 0x6de   :  { %v1187_v1 = vsel %vm189_vm2, %v1185_v0, -inf }
 0x6df   :  { %1188 = vmax.xlane.f32.xlu0 %v1187_v1 }
 0x6e3   :  { %1203 = vadd.xlane.f32.xlu0 %v1202_v4 }
 0x768   :  { %v1189_v7 = vpop.xlane.xlu0 %1188 }
 0x769   :  { %v1193_v8 = vsub.f32 %v1185_v0, %v1189_v7 }
 0x76b   :  { %v1195_v9 = vmul.f32 1.442695, %v1193_v8 }
 0x76c   :  { %v1204_v14 = vpop.xlane.xlu0 %1203 }
 0x76d   :  { %5011 = vpow2.f32 %v1195_v9 }
 0x76e   :  { %5013 = vrcp.f32 %v1204_v14 }
 0x77a   :  { %v5012_v12 = vpop.eup %5011 }
 0x77b   :  { %v1199_v13 = vsel %vm189_vm2, %v5012_v12, 0.0  ;;  %v5014_v16 = vpop.eup %5013 }
 0x77c   :  { %1200 = vadd.xlane.f32.xlu0 %v1199_v13  ;;  %v1208_v18 = vmul.f32 %v5014_v16, %v5010_v3 }
 0x792   :  { %1285 = vrot.lane.b32.xlu0 %v5258_v11, %s5136_s16 }
 0x796   :  { %1445 = vrot.lane.b32.xlu0 %v5254_v10, %s5820_s18 }
 0x805   :  { %v1201_v15 = vpop.xlane.xlu0 %1200 }
 0x806   :  { %5015 = vrcp.f32 %v1201_v15 }
 0x809   :  { %v1286_v17 = vpop.permute.xlu0 %1285 }
 0x80a   :  { %4757 = vmatpush3.msra.mxu1 %v1286_v17 }
 0x80b   :  { %4759 = vmatmul.mubr.msk.f32.vlgmr.msra.gmra.mxu1 %vm189_vm2, %v1208_v18  ;;  %4766 = vmatprep.subr.mxu1 %v5126_v6 }
 0x80c   :  { %4767 = vmatpush3.xpose.msk.msra.mxu1 %vm189_vm2, %v1448_v19  ;;  %4768 = vmatprep.mubr.msk.f32.mxu1 %vm5127_vm1, %v5126_v6 }
 0x80d   :  { %v1446_v20 = vpop.permute.xlu0 %1445  ;;  %4776 = vmatprep.subr.mxu1 %v5126_v6 }
 0x80f   :  { %4769 = vmatmul.mubr.msk.f32.vlgmr.msra.gmra.mxu1 %vm189_vm2, %v1446_v20 }
 0x810   :  { %4778 = vmatprep.mubr.msk.f32.mxu1 %vm5127_vm1, %v5126_v6 }
 0x813   :  { %v5016_v21 = vpop.eup %5015 }
 0x814   :  { %v1207_v23 = vmul.f32 %v5016_v21, %v5012_v12  ;;  %v4457_v12 = vld [vmem:[%s5808_s6] ss:$0 sm:$0xff] }
 0x816   :  { %4754 = vmatmul.mubr.msk.f32.vlgmr.msra.gmra.mxu0 %vm189_vm2, %v1207_v23 }
 0x817   :  { %4762 = vmatpush3.msra.mxu0 %v1361_v24 }
 0x818   :  { %4771 = vmatprep.subr.mxu0 %v5126_v6 }
 0x8cb   :  { %v1357_v25 = vpop.f32.mrf.mxu1 }
 0x8cd   :  { %v4760_v26 = vpop.f32.mrf.mxu1 }
 0x8cf   :  { %v1519_v28 = vpop.f32.mrf.mxu1 }
 0x8d0   :  { %v1601_v29 = vmul.f32 0.35355338, %v1519_v28 }
 0x8d1   :  { %v4770_v30 = vpop.f32.mrf.mxu1 }
 0x8d2   :  { %v1603_v31 = vadd.f32 %v1601_v29, %v5281_v27 }
 0x8d4   :  { %v1605_v32 = vsel %vm189_vm2, %v1603_v31, -inf }
 0x8d5   :  { %1606 = vmax.xlane.f32.xlu0 %v1605_v32 }
 0x8d6   :  { %v1281_v35 = vpop.f32.mrf.mxu0 }
 0x8d7   :  { %4763 = vmatprep.mubr.msk.f32.mxu0 %vm189_vm2, %v1281_v35  ;;  %v1920_v35 = vld [vmem:[%s5811_s9 + $0x8] sm:$0xff] }
 0x8d8   :  { %v4755_v36 = vpop.f32.mrf.mxu0  ;;  %4764 = vmatmul.mubr.msk.f32.vlgmr.msra.gmra.mxu0 %vm189_vm2, %v1357_v25 }
 0x8d9   :  { %4772 = vmatpush3.xpose.msk.msra.mxu0 %vm189_vm2, %v1526_v34  ;;  %4773 = vmatprep.mubr.msk.f32.mxu0 %vm5127_vm1, %v5126_v6  ;;  %v1921_v34 = vld [vmem:[%s5811_s9 + $0x10] sm:$0xff]  ;;  %v1919_v36 = vld [vmem:[%s5811_s9] sm:$0xff] }
 0x8da   :  { %4781 = vmatprep.subr.mxu0 %v5126_v6 }
 0x8dc   :  { %4774 = vmatmul.mubr.msk.f32.vlgmr.msra.gmra.mxu0 %vm189_vm2, %v1524_v37  ;;  %v2020_v37 = vld [vmem:[%s5813_s11 + $0x38] sm:$0xff] }
 0x8dd   :  { %4783 = vmatprep.mubr.msk.f32.mxu0 %vm5127_vm1, %v5126_v6 }
 0x95e   :  { %v1607_v38 = vpop.xlane.xlu0 %1606 }
 0x95f   :  { %v1611_v39 = vsub.f32 %v1603_v31, %v1607_v38  ;;  %v2019_v38 = vld [vmem:[%s5813_s11 + $0x30] sm:$0xff] }
 0x961   :  { %v1613_v40 = vmul.f32 1.442695, %v1611_v39  ;;  %v2018_v39 = vld [vmem:[%s5813_s11 + $0x28] sm:$0xff] }
 0x963   :  { %5017 = vpow2.f32 %v1613_v40  ;;  %v2017_v40 = vld [vmem:[%s5813_s11 + $0x20] sm:$0xff] }
 0x970   :  { %v5018_v41 = vpop.eup %5017 }
 0x971   :  { %v1617_v42 = vsel %vm189_vm2, %v5018_v41, 0.0 }
 0x972   :  { %1618 = vadd.xlane.f32.xlu0 %v1617_v42 }
 0x998   :  { %v4765_v44 = vpop.f32.mrf.mxu0 }
 0x999   :  { %v1444_v46 = vadd.f32 %v4765_v44, %v1024_v43 }
 0x99a   :  { %v1434_v47 = vpop.f32.mrf.mxu0 }
 0x99b   :  { %v1443_v50 = vadd.f32 %v1434_v47, %v1019_v45 }
 0x99c   :  { %v1597_v51 = vpop.f32.mrf.mxu0 }
 0x99d   :  { %v1602_v52 = vmul.f32 0.35355338, %v1597_v51  ;;  %v4458_v51 = vld [vmem:[%s5809_s7] ss:$0 sm:$0xff] }
 0x99e   :  { %v4775_v53 = vpop.f32.mrf.mxu0 }
 0x99f   :  { %v1604_v54 = vadd.f32 %v1602_v52, %v5285_v33 }
 0x9a1   :  { %v1608_v55 = vsel %vm189_vm2, %v1604_v54, -inf }
 0x9a2   :  { %1609 = vmax.xlane.f32.xlu1 %v1608_v55 }
 0x9b3   :  { %1627 = vrot.lane.b32.xlu1 %v5254_v10, %s5818_s28  ;;  %v1779_v10 = vld [vmem:[%s5807_s5 + $0x18] sm:$0xff] }
 0x9fb   :  { %v1619_v48 = vpop.xlane.xlu0 %1618 }
 0x9fc   :  { %5019 = vrcp.f32 %v1619_v48  ;;  %v4459_v48 = vld [vmem:[%s5810_s8] ss:$0 sm:$0xff] }
 0xa09   :  { %v5020_v57 = vpop.eup %5019 }
 0xa0a   :  { %v1625_v60 = vmul.f32 %v5020_v57, %v5018_v41 }
 0xa2b   :  { %v1610_v56 = vpop.xlane.xlu1 %1609 }
 0xa2c   :  { %v1612_v49 = vsub.f32 %v1604_v54, %v1610_v56 }
 0xa2e   :  { %v1615_v58 = vmul.f32 1.442695, %v1612_v49  ;;  %v2016_v49 = vld [vmem:[%s5813_s11 + $0x18] sm:$0xff] }
 0xa2f   :  { %v1628_v59 = vpop.permute.xlu1 %1627 }
 0xa30   :  { %5021 = vpow2.f32 %v1615_v58  ;;  %4777 = vmatpush3.msra.mxu1 %v1628_v59  ;;  %v2015_v58 = vld [vmem:[%s5813_s11 + $0x10] sm:$0xff]  ;;  %v2014_v59 = vld [vmem:[%s5813_s11 + $0x8] sm:$0xff] }
 0xa31   :  { %4779 = vmatmul.mubr.msk.f32.vlgmr.msra.gmra.mxu1 %vm189_vm2, %v1625_v60  ;;  %4786 = vmatprep.subr.mxu1 %v1779_v10  ;;  %v2013_v60 = vld [vmem:[%s5813_s11] sm:$0xff] }
 0xa32   :  { %4787 = vmatpush3.msra.mxu1 %v1779_v10 }
 0xa33   :  { %4802 = vmatprep.subr.mxu1 %v2020_v37 }
 0xa3d   :  { %v5022_v61 = vpop.eup %5021 }
 0xa3e   :  { %v1620_v62 = vsel %vm189_vm2, %v5022_v61, 0.0 }
 0xa3f   :  { %1621 = vadd.xlane.f32.xlu0 %v1620_v62 }
 0xa55   :  { %1703 = vrot.lane.b32.xlu0 %v5258_v11, %s5818_s28 }
 0xac8   :  { %v1622_v63 = vpop.xlane.xlu0 %1621 }
 0xac9   :  { %5023 = vrcp.f32 %v1622_v63 }
 0xacc   :  { %v1704_v0 = vpop.permute.xlu0 %1703 }
 0xacd   :  { %4782 = vmatpush3.msra.mxu0 %v1704_v0 }
 0xad6   :  { %v5024_v1 = vpop.eup %5023 }
 0xad7   :  { %v1626_v3 = vmul.f32 %v5024_v1, %v5022_v61  ;;  %v4460_v61 = vld [vmem:[%s5812_s10] ss:$0 sm:$0xff] }
 0xad9   :  { %4784 = vmatmul.mubr.msk.f32.vlgmr.msra.gmra.mxu0 %vm189_vm2, %v1626_v3 }
 0xaf1   :  { %v1699_v4 = vpop.f32.mrf.mxu1 }
 0xaf2   :  { %4788 = vmatprep.mubr.msk.f32.mxu1 %vm189_vm2, %v1699_v4  ;;  %v4463_v4 = vld [vmem:[%s5814_s12] ss:$0 sm:$0xff] }
 0xaf3   :  { %v4780_v7 = vpop.f32.mrf.mxu1 }
 0xb99   :  { %v1775_v8 = vpop.f32.mrf.mxu0 }
 0xb9a   :  { %4789 = vmatmul.mubr.msk.f32.vlgmr.msra.gmra.mxu1 %vm189_vm2, %v1775_v8 }
 0xb9b   :  { %v4785_v11 = vpop.f32.mrf.mxu0  ;;  %4803 = vmatpush3.msra.mxu1 %v2020_v37 }
 0xb9c   :  { %4804 = vmatprep.subr.mxu1 %v2019_v38 }
 0xb9d   :  { %4805 = vmatpush3.msra.mxu1 %v2019_v38 }
 0xb9e   :  { %4806 = vmatprep.subr.mxu1 %v2018_v39 }
 0xb9f   :  { %4807 = vmatpush3.msra.mxu1 %v2018_v39  ;;  %v4466_v39 = vld [vmem:[%s5815_s13] ss:$0 sm:$0xff] }
 0xba0   :  { %4808 = vmatprep.subr.mxu1 %v2017_v40 }
 0xba1   :  { %4809 = vmatpush3.msra.mxu1 %v2017_v40 }
 0xba2   :  { %4810 = vmatprep.subr.mxu1 %v2016_v49 }
 0xba3   :  { %4811 = vmatpush3.msra.mxu1 %v2016_v49 }
 0xba4   :  { %4812 = vmatprep.subr.mxu1 %v2015_v58 }
 0xba5   :  { %4813 = vmatpush3.msra.mxu1 %v2015_v58 }
 0xba6   :  { %4814 = vmatprep.subr.mxu1 %v2014_v59 }
 0xba7   :  { %4815 = vmatpush3.msra.mxu1 %v2014_v59 }
 0xba8   :  { %4816 = vmatprep.subr.mxu1 %v2013_v60 }
 0xba9   :  { %4817 = vmatpush3.msra.mxu1 %v2013_v60 }
 0xbaa   :  { %4837 = vmatprep.subr.mxu1 %v5126_v6 }
 0xc5a   :  { %v4790_v9 = vpop.f32.mrf.mxu1 }
 0xc5b   :  { %v1862_v13 = vadd.f32 %v4790_v9, %v1444_v46 }
 0xc5c   :  { %v1852_v14 = vpop.f32.mrf.mxu1 }
 0xc5d   :  { %v1871_v15 = vadd.f32 %v4457_v12, %v1862_v13  ;;  %v1861_v16 = vadd.f32 %v1852_v14, %v1443_v50 }
 0xc5f   :  { %v1870_v17 = vadd.f32 %v4457_v12, %v1861_v16  ;;  %v1873_v18 = vadd.f32 %v1871_v15, %v5241_v5 }
 0xc61   :  { %v1877_v19 = vsel %vm104_vm0, %v1873_v18, 0.0  ;;  %v1872_v20 = vadd.f32 %v1870_v17, %v5231_v2  ;;  %v1922_v2 = vld [vmem:[%s5811_s9 + $0x18] sm:$0xff] }
 0xc62   :  { %1878 = vadd.xlane.f32.xlu0 %v1877_v19  ;;  %4791 = vmatprep.subr.mxu0 %v1922_v2 }
 0xc63   :  { %v1874_v21 = vsel %vm104_vm0, %v1872_v20, 0.0  ;;  %4792 = vmatpush3.msra.mxu0 %v1922_v2 }
 0xc64   :  { %1875 = vadd.xlane.f32.xlu1 %v1874_v21  ;;  %4793 = vmatprep.subr.mxu0 %v1921_v34 }
 0xc65   :  { %4794 = vmatpush3.msra.mxu0 %v1921_v34 }
 0xc66   :  { %4795 = vmatprep.subr.mxu0 %v1920_v35 }
 0xc67   :  { %4796 = vmatpush3.msra.mxu0 %v1920_v35 }
 0xc68   :  { %4797 = vmatprep.subr.mxu0 %v1919_v36 }
 0xc69   :  { %4798 = vmatpush3.msra.mxu0 %v1919_v36 }
 0xceb   :  { %v1879_v23 = vpop.xlane.xlu0 %1878 }
 0xcec   :  { %v1882_v24 = vmul.f32 0.03125, %v1879_v23 }
 0xced   :  { %v1876_v25 = vpop.xlane.xlu1 %1875 }
 0xcee   :  { %v1884_v26 = vsub.f32 %v1873_v18, %v1882_v24  ;;  %v1881_v28 = vmul.f32 0.03125, %v1876_v25 }
 0xcf0   :  { %v1883_v29 = vsub.f32 %v1872_v20, %v1881_v28  ;;  %v1886_v30 = vmul.f32 %v1884_v26, %v1884_v26  ;;  %v4471_v28 = vld [vmem:[%s5805_s3 + $0x38] sm:$0xff] }
 0xcf1   :  { %4821 = vmatprep.subr.mxu0 %v4471_v28 }
 0xcf2   :  { %v1890_v31 = vsel %vm104_vm0, %v1886_v30, 0.0  ;;  %v1885_v32 = vmul.f32 %v1883_v29, %v1883_v29  ;;  %v4469_v30 = vld [vmem:[%s5805_s3 + $0x28] sm:$0xff] }
 0xcf3   :  { %1891 = vadd.xlane.f32.xlu0 %v1890_v31  ;;  %v4468_v31 = vld [vmem:[%s5805_s3 + $0x20] sm:$0xff] }
 0xcf4   :  { %v1887_v5 = vsel %vm104_vm0, %v1885_v32, 0.0 }
 0xcf5   :  { %1888 = vadd.xlane.f32.xlu1 %v1887_v5 }
 0xd7c   :  { %v1892_v41 = vpop.xlane.xlu0 %1891 }
 0xd7d   :  { %v1894_v42 = vmul.f32 0.03125, %v1892_v41 }
 0xd7e   :  { %v1889_v43 = vpop.xlane.xlu1 %1888 }
 0xd7f   :  { %v1896_v44 = vadd.f32 1e-05, %v1894_v42  ;;  %v1893_v45 = vmul.f32 0.03125, %v1889_v43 }
 0xd81   :  { %5025 = vrsqrt.f32 %v1896_v44  ;;  %v1895_v46 = vadd.f32 1e-05, %v1893_v45  ;;  %v4467_v44 = vld [vmem:[%s5816_s14] ss:$0 sm:$0xff] }
 0xd83   :  { %5027 = vrsqrt.f32 %v1895_v46 }
 0xd8e   :  { %v5026_v47 = vpop.eup %5025 }
 0xd8f   :  { %v1900_v50 = vmul.f32 %v5026_v47, %v1884_v26  ;;  %v4473_v47 = vld [vmem:[%s5806_s4 + $0x1] ss:$0 sm:$0xff] }
 0xd90   :  { %v5028_v52 = vpop.eup %5027 }
 0xd91   :  { %v1899_v53 = vmul.f32 %v5028_v52, %v1883_v29  ;;  %v1909_v54 = vmul.f32 %v4458_v51, %v1900_v50  ;;  %v4470_v29 = vld [vmem:[%s5805_s3 + $0x30] sm:$0xff] }
 0xd93   :  { %v1908_v55 = vmul.f32 %v4458_v51, %v1899_v53  ;;  %v1918_v57 = vadd.f32 %v4459_v48, %v1909_v54 }
 0xd95   :  { %v1917_v56 = vadd.f32 %v4459_v48, %v1908_v55 }
 0xd97   :  { %4799 = vmatprep.mubr.msk.f32.mxu0 %vm104_vm0, %v1917_v56 }
 0xd98   :  { %4800 = vmatmul.mubr.msk.f32.vlgmr.msra.gmra.mxu0 %vm104_vm0, %v1918_v57 }
 0xd99   :  { %4822 = vmatpush3.msra.mxu0 %v4471_v28 }
 0xd9a   :  { %4823 = vmatprep.subr.mxu0 %v4470_v29 }
 0xd9b   :  { %4824 = vmatpush3.msra.mxu0 %v4470_v29 }
 0xd9c   :  { %4825 = vmatprep.subr.mxu0 %v4469_v30 }
 0xd9d   :  { %4826 = vmatpush3.msra.mxu0 %v4469_v30 }
 0xd9e   :  { %4827 = vmatprep.subr.mxu0 %v4468_v31 }
 0xd9f   :  { %4828 = vmatpush3.msra.mxu0 %v4468_v31 }
 0xda0   :  { %4832 = vmatprep.subr.mxu0 %v5126_v6 }
 0xe58   :  { %v4801_v62 = vpop.f32.mrf.mxu0 }
 0xe59   :  { %v2008_v10 = vadd.f32 %v4801_v62, %v4460_v61 }
 0xe5a   :  { %v2002_v63 = vpop.f32.mrf.mxu0 }
 0xe5b   :  { %v2003_v0 = vadd.f32 %v4460_v61, %v2002_v63  ;;  %v2012_v3 = vmax.f32 %v2008_v10, 0.0 }
 0xe5d   :  { %v2011_v1 = vmax.f32 %v2003_v0, 0.0 }
 0xe5f   :  { %4818 = vmatprep.mubr.msk.f32.mxu1 %vm2028_vm3, %v2011_v1 }
 0xe60   :  { %4819 = vmatmul.mubr.msk.f32.vlgmr.msra.gmra.mxu1 %vm2028_vm3, %v2012_v3 }
 0xe61   :  { %4839 = vmatprep.mubr.msk.f32.mxu1 %vm5127_vm1, %v5126_v6 }
 0xf20   :  { %v4820_v7 = vpop.f32.mrf.mxu1 }
 0xf21   :  { %v2107_v8 = vadd.f32 %v4820_v7, %v4463_v4 }
 0xf22   :  { %v2101_v11 = vpop.f32.mrf.mxu1 }
 0xf23   :  { %v2102_v9 = vadd.f32 %v4463_v4, %v2101_v11  ;;  %v2111_v12 = vadd.f32 %v2107_v8, %v1918_v57 }
 0xf25   :  { %v2115_v13 = vsel %vm104_vm0, %v2111_v12, 0.0  ;;  %v2110_v14 = vadd.f32 %v2102_v9, %v1917_v56 }
 0xf26   :  { %2116 = vadd.xlane.f32.xlu0 %v2115_v13 }
 0xf27   :  { %v2112_v15 = vsel %vm104_vm0, %v2110_v14, 0.0 }
 0xf28   :  { %2113 = vadd.xlane.f32.xlu1 %v2112_v15 }
 0xfaf   :  { %v2117_v16 = vpop.xlane.xlu0 %2116 }
 0xfb0   :  { %v2119_v17 = vmul.f32 0.03125, %v2117_v16 }
 0xfb1   :  { %v2114_v18 = vpop.xlane.xlu1 %2113 }
 0xfb2   :  { %v2121_v19 = vsub.f32 %v2111_v12, %v2119_v17  ;;  %v2118_v20 = vmul.f32 0.03125, %v2114_v18 }
 0xfb4   :  { %v2120_v21 = vsub.f32 %v2110_v14, %v2118_v20  ;;  %v2123_v23 = vmul.f32 %v2121_v19, %v2121_v19 }
 0xfb6   :  { %v2127_v24 = vsel %vm104_vm0, %v2123_v23, 0.0  ;;  %v2122_v25 = vmul.f32 %v2120_v21, %v2120_v21 }
 0xfb7   :  { %2128 = vadd.xlane.f32.xlu0 %v2127_v24 }
 0xfb8   :  { %v2124_v26 = vsel %vm104_vm0, %v2122_v25, 0.0 }
 0xfb9   :  { %2125 = vadd.xlane.f32.xlu1 %v2124_v26 }
0x1040   :  { %v2129_v32 = vpop.xlane.xlu0 %2128 }
0x1041   :  { %v2131_v5 = vmul.f32 0.03125, %v2129_v32 }
0x1042   :  { %v2126_v2 = vpop.xlane.xlu1 %2125 }
0x1043   :  { %v2133_v34 = vadd.f32 1e-05, %v2131_v5  ;;  %v2130_v35 = vmul.f32 0.03125, %v2126_v2 }
0x1045   :  { %5029 = vrsqrt.f32 %v2133_v34  ;;  %v2132_v36 = vadd.f32 1e-05, %v2130_v35 }
0x1047   :  { %5031 = vrsqrt.f32 %v2132_v36 }
0x1052   :  { %v5030_v37 = vpop.eup %5029 }
0x1053   :  { %v2137_v38 = vmul.f32 %v5030_v37, %v2121_v19 }
0x1054   :  { %v5032_v40 = vpop.eup %5031 }
0x1055   :  { %v2136_v41 = vmul.f32 %v5032_v40, %v2120_v21  ;;  %v2146_v42 = vmul.f32 %v4466_v39, %v2137_v38 }
0x1057   :  { %v2145_v43 = vmul.f32 %v4466_v39, %v2136_v41  ;;  %v5527_v46 = vadd.f32 %v4467_v44, %v2146_v42 }
0x1059   :  { %v5525_v45 = vadd.f32 %v4467_v44, %v2145_v43 }
0x105b   :  { %4829 = vmatprep.mubr.msk.f32.mxu0 %vm104_vm0, %v5525_v45 }
0x105c   :  { %4830 = vmatmul.mubr.msk.f32.vlgmr.msra.gmra.mxu0 %vm104_vm0, %v5527_v46 }
0x105d   :  { %4834 = vmatprep.mubr.msk.f32.mxu0 %vm5127_vm1, %v5126_v6 }
0x111c   :  { %v4831_v50 = vpop.f32.mrf.mxu0 }
0x111d   :  { %v5538_v51 = vadd.f32 %v4831_v50, %v4473_v47 }
0x111e   :  { %v2241_v52 = vpop.f32.mrf.mxu0 }
0x111f   :  { %v5540_v53 = vadd.f32 %v4473_v47, %v2241_v52  ;;  %2328 = vrot.lane.b32.xlu0 %v5538_v51, %s5128_s19 }
0x1121   :  { %2251 = vrot.lane.b32.xlu1 %v5540_v53, %s5128_s19 }
0x1191   :  { %v2329_v54 = vpop.permute.xlu0 %2328 }
0x1192   :  { %4838 = vmatpush3.xpose.msk.msra.mxu1 %vm189_vm2, %v2329_v54 }
0x1193   :  { %v2252_v55 = vpop.permute.xlu1 %2251  ;;  %4847 = vmatprep.subr.mxu1 %v5126_v6 }
0x1194   :  { %4833 = vmatpush3.xpose.msk.msra.mxu0 %vm189_vm2, %v2252_v55 }
0x1195   :  { %4840 = vmatmul.mubr.msk.f32.vlgmr.msra.gmra.mxu1 %vm189_vm2, %v5538_v51  ;;  %4842 = vmatprep.subr.mxu0 %v5126_v6 }
0x1196   :  { %4849 = vmatprep.mubr.msk.f32.mxu1 %vm5127_vm1, %v5126_v6 }
0x1197   :  { %4835 = vmatmul.mubr.msk.f32.vlgmr.msra.gmra.mxu0 %vm189_vm2, %v5540_v53 }
0x1198   :  { %4844 = vmatprep.mubr.msk.f32.mxu0 %vm5127_vm1, %v5126_v6 }
0x1255   :  { %v2400_v48 = vpop.f32.mrf.mxu1 }
0x1256   :  { %v2405_v56 = vmul.f32 0.35355338, %v2400_v48 }
0x1257   :  { %v2323_v57 = vpop.f32.mrf.mxu0  ;;  %v4841_v49 = vpop.f32.mrf.mxu1 }
0x1258   :  { %v2404_v58 = vmul.f32 0.35355338, %v2323_v57  ;;  %v2407_v59 = vadd.f32 %v2405_v56, %v5285_v33  ;;  %v4482_v49 = vld [vmem:[%s5807_s5 + $0x20] sm:$0xff] }
0x1259   :  { %v4836_v60 = vpop.f32.mrf.mxu0 }
0x125a   :  { %v2411_v61 = vsel %vm189_vm2, %v2407_v59, -inf  ;;  %v2406_v62 = vadd.f32 %v2404_v58, %v5281_v27 }
0x125b   :  { %2412 = vmax.xlane.f32.xlu0 %v2411_v61 }
0x125c   :  { %v2408_v10 = vsel %vm189_vm2, %v2406_v62, -inf }
0x125d   :  { %2409 = vmax.xlane.f32.xlu1 %v2408_v10 }
0x126e   :  { %2430 = vrot.lane.b32.xlu1 %v5540_v53, %s5130_s22 }
0x1271   :  { %2506 = vrot.lane.b32.xlu0 %v5538_v51, %s5130_s22 }
0x1272   :  { %2586 = vrot.lane.b32.xlu1 %v5540_v53, %s5131_s23 }
0x1276   :  { %2664 = vrot.lane.b32.xlu1 %v5538_v51, %s5131_s23 }
0x12e4   :  { %v2413_v63 = vpop.xlane.xlu0 %2412 }
0x12e5   :  { %v2415_v0 = vsub.f32 %v2407_v59, %v2413_v63 }
0x12e6   :  { %v2410_v1 = vpop.xlane.xlu1 %2409 }
0x12e7   :  { %v2418_v3 = vmul.f32 1.442695, %v2415_v0  ;;  %v2414_v4 = vsub.f32 %v2406_v62, %v2410_v1  ;;  %v4489_v1 = vld [vmem:[%s5807_s5 + $0x28] sm:$0xff] }
0x12e8   :  { %v2507_v7 = vpop.permute.xlu0 %2506 }
0x12e9   :  { %5033 = vpow2.f32 %v2418_v3  ;;  %v2416_v8 = vmul.f32 1.442695, %v2414_v4  ;;  %4848 = vmatpush3.msra.mxu1 %v2507_v7 }
0x12ea   :  { %v2431_v11 = vpop.permute.xlu1 %2430  ;;  %4857 = vmatprep.subr.mxu1 %v5126_v6 }
0x12eb   :  { %5035 = vpow2.f32 %v2416_v8  ;;  %4843 = vmatpush3.msra.mxu0 %v2431_v11 }
0x12ec   :  { %4852 = vmatprep.subr.mxu0 %v5126_v6 }
0x12ee   :  { %v2587_v15 = vpop.permute.xlu1 %2586 }
0x12f2   :  { %v2665_v16 = vpop.permute.xlu1 %2664 }
0x12f6   :  { %v5034_v9 = vpop.eup %5033 }
0x12f7   :  { %v2423_v12 = vsel %vm189_vm2, %v5034_v9, 0.0 }
0x12f8   :  { %v5036_v13 = vpop.eup %5035  ;;  %2424 = vadd.xlane.f32.xlu0 %v2423_v12 }
0x12f9   :  { %v2420_v14 = vsel %vm189_vm2, %v5036_v13, 0.0 }
0x12fa   :  { %2421 = vadd.xlane.f32.xlu1 %v2420_v14 }
0x130b   :  { %2662 = vrot.lane.b32.xlu1 %v5538_v51, %s5132_s24 }
0x130e   :  { %2584 = vrot.lane.b32.xlu0 %v5540_v53, %s5132_s24  ;;  %s5824_s24 = smov 72  }
0x1381   :  { %v2425_v17 = vpop.xlane.xlu0 %2424 }
0x1382   :  { %5037 = vrcp.f32 %v2425_v17 }
0x1383   :  { %v2422_v18 = vpop.xlane.xlu1 %2421 }
0x1384   :  { %5039 = vrcp.f32 %v2422_v18 }
0x1385   :  { %v2585_v25 = vpop.permute.xlu0 %2584 }
0x1387   :  { %v2663_v24 = vpop.permute.xlu1 %2662 }
0x138f   :  { %v5038_v19 = vpop.eup %5037 }
0x1390   :  { %v2429_v20 = vmul.f32 %v5038_v19, %v5034_v9 }
0x1391   :  { %v5040_v21 = vpop.eup %5039 }
0x1392   :  { %4850 = vmatmul.mubr.msk.f32.vlgmr.msra.gmra.mxu1 %vm189_vm2, %v2429_v20  ;;  %v2428_v23 = vmul.f32 %v5040_v21, %v5036_v13 }
0x1393   :  { %4858 = vmatpush3.xpose.msk.msra.mxu1 %vm189_vm2, %v2665_v16  ;;  %4859 = vmatprep.mubr.msk.f32.mxu1 %vm5127_vm1, %v5126_v6 }
0x1394   :  { %4845 = vmatmul.mubr.msk.f32.vlgmr.msra.gmra.mxu0 %vm189_vm2, %v2428_v23  ;;  %4867 = vmatprep.subr.mxu1 %v5126_v6 }
0x1395   :  { %4853 = vmatpush3.xpose.msk.msra.mxu0 %vm189_vm2, %v2587_v15  ;;  %4854 = vmatprep.mubr.msk.f32.mxu0 %vm5127_vm1, %v5126_v6 }
0x1396   :  { %4860 = vmatmul.mubr.msk.f32.vlgmr.msra.gmra.mxu1 %vm189_vm2, %v2663_v24  ;;  %4862 = vmatprep.subr.mxu0 %v5126_v6 }
0x1397   :  { %4869 = vmatprep.mubr.msk.f32.mxu1 %vm5127_vm1, %v5126_v6 }
0x1398   :  { %4855 = vmatmul.mubr.msk.f32.vlgmr.msra.gmra.mxu0 %vm189_vm2, %v2585_v25 }
0x1399   :  { %4864 = vmatprep.mubr.msk.f32.mxu0 %vm5127_vm1, %v5126_v6 }
0x1452   :  { %v2578_v26 = vpop.f32.mrf.mxu1 }
0x1454   :  { %v2502_v28 = vpop.f32.mrf.mxu0  ;;  %v4851_v29 = vpop.f32.mrf.mxu1 }
0x1456   :  { %v4846_v30 = vpop.f32.mrf.mxu0  ;;  %v2736_v31 = vpop.f32.mrf.mxu1 }
0x1457   :  { %v2741_v32 = vmul.f32 0.35355338, %v2736_v31 }
0x1458   :  { %v2658_v5 = vpop.f32.mrf.mxu0  ;;  %v4861_v2 = vpop.f32.mrf.mxu1 }
0x1459   :  { %v2740_v34 = vmul.f32 0.35355338, %v2658_v5  ;;  %v2743_v35 = vadd.f32 %v2741_v32, %v5285_v33 }
0x145a   :  { %v4856_v36 = vpop.f32.mrf.mxu0 }
0x145b   :  { %v2747_v37 = vsel %vm189_vm2, %v2743_v35, -inf  ;;  %v2742_v38 = vadd.f32 %v2740_v34, %v5281_v27 }
0x145c   :  { %2748 = vmax.xlane.f32.xlu1 %v2747_v37 }
0x145d   :  { %v2744_v39 = vsel %vm189_vm2, %v2742_v38, -inf }
0x145e   :  { %2745 = vmax.xlane.f32.xlu0 %v2744_v39 }
0x146d   :  { %2766 = vrot.lane.b32.xlu1 %v5540_v53, %s5133_s25 }
0x1471   :  { %3083 = vrot.lane.b32.xlu1 %v5540_v53, %s5135_s27 }
0x1475   :  { %3161 = vrot.lane.b32.xlu1 %v5538_v51, %s5135_s27 }
0x1479   :  { %3159 = vrot.lane.b32.xlu1 %v5538_v51, %s5134_s26 }
0x14e5   :  { %v2749_v40 = vpop.xlane.xlu1 %2748 }
0x14e6   :  { %v2751_v41 = vsub.f32 %v2743_v35, %v2749_v40 }
0x14e7   :  { %v2746_v42 = vpop.xlane.xlu0 %2745 }
0x14e8   :  { %v2754_v43 = vmul.f32 1.442695, %v2751_v41  ;;  %v2750_v44 = vsub.f32 %v2742_v38, %v2746_v42 }
0x14e9   :  { %v2767_v47 = vpop.permute.xlu1 %2766 }
0x14ea   :  { %5041 = vpow2.f32 %v2754_v43  ;;  %v2752_v50 = vmul.f32 1.442695, %v2750_v44  ;;  %4863 = vmatpush3.msra.mxu0 %v2767_v47 }
0x14eb   :  { %4872 = vmatprep.subr.mxu0 %v4489_v1 }
0x14ec   :  { %5043 = vpow2.f32 %v2752_v50  ;;  %v4500_v50 = vld [vmem:[%s5807_s5 + $0x30] sm:$0xff] }
0x14ed   :  { %v3084_v59 = vpop.permute.xlu1 %3083 }
0x14f1   :  { %v3162_v10 = vpop.permute.xlu1 %3161 }
0x14f5   :  { %v3160_v0 = vpop.permute.xlu1 %3159 }
0x14f7   :  { %v5042_v52 = vpop.eup %5041 }
0x14f8   :  { %v2759_v54 = vsel %vm189_vm2, %v5042_v52, 0.0 }
0x14f9   :  { %v5044_v55 = vpop.eup %5043  ;;  %2760 = vadd.xlane.f32.xlu0 %v2759_v54 }
0x14fa   :  { %v2756_v48 = vsel %vm189_vm2, %v5044_v55, 0.0 }
0x14fd   :  { %2757 = vadd.xlane.f32.xlu0 %v2756_v48 }
0x1513   :  { %2842 = vrot.lane.b32.xlu0 %v5538_v51, %s5133_s25  ;;  %s5825_s25 = smov 104  }
0x1517   :  { %3081 = vrot.lane.b32.xlu0 %v5540_v53, %s5134_s26 }
0x1582   :  { %v2761_v56 = vpop.xlane.xlu0 %2760 }
0x1583   :  { %5045 = vrcp.f32 %v2761_v56 }
0x1586   :  { %v2758_v57 = vpop.xlane.xlu0 %2757 }
0x1587   :  { %5047 = vrcp.f32 %v2758_v57 }
0x158a   :  { %v2843_v58 = vpop.permute.xlu0 %2842 }
0x158b   :  { %4868 = vmatpush3.msra.mxu1 %v2843_v58 }
0x158c   :  { %4877 = vmatprep.subr.mxu1 %v4482_v49 }
0x158e   :  { %v3082_v13 = vpop.permute.xlu0 %3081 }
0x1590   :  { %v5046_v60 = vpop.eup %5045 }
0x1591   :  { %v2765_v61 = vmul.f32 %v5046_v60, %v5042_v52 }
0x1593   :  { %4870 = vmatmul.mubr.msk.f32.vlgmr.msra.gmra.mxu1 %vm189_vm2, %v2765_v61 }
0x1594   :  { %v5048_v62 = vpop.eup %5047  ;;  %4879 = vmatprep.mubr.msk.f32.mxu1 %vm189_vm2, %v2502_v28  ;;  %4878 = vmatpush3.msra.mxu1 %v4482_v49 }
0x1595   :  { %4887 = vmatprep.subr.mxu1 %v5126_v6  ;;  %v2764_v63 = vmul.f32 %v5048_v62, %v5044_v55 }
0x1597   :  { %4865 = vmatmul.mubr.msk.f32.vlgmr.msra.gmra.mxu0 %vm189_vm2, %v2764_v63  ;;  %4880 = vmatmul.mubr.msk.f32.vlgmr.msra.gmra.mxu1 %vm189_vm2, %v2578_v26 }
0x1598   :  { %4888 = vmatpush3.xpose.msk.msra.mxu1 %vm189_vm2, %v3162_v10  ;;  %4889 = vmatprep.mubr.msk.f32.mxu1 %vm5127_vm1, %v5126_v6 }
0x1599   :  { %4897 = vmatprep.subr.mxu1 %v5126_v6  ;;  %4873 = vmatpush3.msra.mxu0 %v4489_v1 }
0x159a   :  { %4882 = vmatprep.subr.mxu0 %v5126_v6 }
0x159b   :  { %4890 = vmatmul.mubr.msk.f32.vlgmr.msra.gmra.mxu1 %vm189_vm2, %v3160_v0 }
0x159c   :  { %4899 = vmatprep.mubr.msk.f32.mxu1 %vm5127_vm1, %v5126_v6 }
0x1653   :  { %v2914_v3 = vpop.f32.mrf.mxu1 }
0x1655   :  { %v4871_v4 = vpop.f32.mrf.mxu1 }
0x1657   :  { %v2838_v7 = vpop.f32.mrf.mxu0  ;;  %v5631_v8 = vpop.f32.mrf.mxu1 }
0x1658   :  { %4874 = vmatprep.mubr.msk.f32.mxu0 %vm189_vm2, %v2838_v7 }
0x1659   :  { %v4866_v11 = vpop.f32.mrf.mxu0  ;;  %4875 = vmatmul.mubr.msk.f32.vlgmr.msra.gmra.mxu0 %vm189_vm2, %v2914_v3  ;;  %v5635_v9 = vpop.f32.mrf.mxu1 }
0x165a   :  { %4883 = vmatpush3.xpose.msk.msra.mxu0 %vm189_vm2, %v3084_v59  ;;  %4884 = vmatprep.mubr.msk.f32.mxu0 %vm5127_vm1, %v5126_v6 }
0x165b   :  { %v3233_v12 = vpop.f32.mrf.mxu1  ;;  %4892 = vmatprep.subr.mxu0 %v5126_v6 }
0x165c   :  { %v3238_v14 = vmul.f32 0.35355338, %v3233_v12 }
0x165d   :  { %4885 = vmatmul.mubr.msk.f32.vlgmr.msra.gmra.mxu0 %vm189_vm2, %v3082_v13  ;;  %v4891_v15 = vpop.f32.mrf.mxu1 }
0x165e   :  { %v3240_v16 = vadd.f32 %v3238_v14, %v5285_v33  ;;  %4894 = vmatprep.mubr.msk.f32.mxu0 %vm5127_vm1, %v5126_v6 }
0x1660   :  { %v3244_v17 = vsel %vm189_vm2, %v3240_v16, -inf }
0x1661   :  { %3245 = vmax.xlane.f32.xlu1 %v3244_v17 }
0x1672   :  { %3263 = vrot.lane.b32.xlu1 %v5540_v53, %s5136_s16 }
0x1676   :  { %3501 = vrot.lane.b32.xlu1 %v5540_v53, %s5824_s24 }
0x167a   :  { %3579 = vrot.lane.b32.xlu1 %v5538_v51, %s5824_s24 }
0x167e   :  { %3577 = vrot.lane.b32.xlu1 %v5538_v51, %s5825_s25 }
0x16ea   :  { %v3246_v18 = vpop.xlane.xlu1 %3245 }
0x16eb   :  { %v3248_v20 = vsub.f32 %v3240_v16, %v3246_v18 }
0x16ed   :  { %v3251_v21 = vmul.f32 1.442695, %v3248_v20 }
0x16ee   :  { %v3264_v19 = vpop.permute.xlu1 %3263 }
0x16ef   :  { %4893 = vmatpush3.msra.mxu0 %v3264_v19  ;;  %5049 = vpow2.f32 %v3251_v21 }
0x16f0   :  { %4902 = vmatprep.subr.mxu0 %v4500_v50 }
0x16f2   :  { %v3502_v42 = vpop.permute.xlu1 %3501 }
0x16f6   :  { %v3580_v58 = vpop.permute.xlu1 %3579 }
0x16fa   :  { %v3578_v61 = vpop.permute.xlu1 %3577 }
0x16fc   :  { %v5050_v31 = vpop.eup %5049 }
0x16fd   :  { %v3256_v32 = vsel %vm189_vm2, %v5050_v31, 0.0 }
0x1719   :  { %v5654_v23 = vpop.f32.mrf.mxu0 }
0x171a   :  { %v3078_v1 = vadd.f32 %v5631_v8, %v5654_v23 }
0x171b   :  { %v5656_v24 = vpop.f32.mrf.mxu0 }
0x171c   :  { %v3073_v4 = vadd.f32 %v5635_v9, %v5656_v24 }
0x171d   :  { %v3155_v25 = vpop.f32.mrf.mxu0 }
0x171e   :  { %v3237_v26 = vmul.f32 0.35355338, %v3155_v25 }
0x171f   :  { %v4886_v28 = vpop.f32.mrf.mxu0 }
0x1720   :  { %v3239_v29 = vadd.f32 %v3237_v26, %v5281_v27 }
0x1722   :  { %v3241_v30 = vsel %vm189_vm2, %v3239_v29, -inf }
0x1723   :  { %3242 = vmax.xlane.f32.xlu0 %v3241_v30 }
0x1727   :  { %3257 = vadd.xlane.f32.xlu0 %v3256_v32 }
0x17ac   :  { %v3243_v5 = vpop.xlane.xlu0 %3242 }
0x17ad   :  { %v3247_v2 = vsub.f32 %v3239_v29, %v3243_v5 }
0x17af   :  { %v3249_v34 = vmul.f32 1.442695, %v3247_v2  ;;  %v4513_v2 = vld [vmem:[%s5808_s6 + $0x1] ss:$0 sm:$0xff] }
0x17b0   :  { %v3258_v37 = vpop.xlane.xlu0 %3257 }
0x17b1   :  { %5051 = vpow2.f32 %v3249_v34 }
0x17b2   :  { %5053 = vrcp.f32 %v3258_v37 }
0x17be   :  { %v5052_v35 = vpop.eup %5051 }
0x17bf   :  { %v3253_v36 = vsel %vm189_vm2, %v5052_v35, 0.0  ;;  %v5054_v39 = vpop.eup %5053 }
0x17c0   :  { %3254 = vadd.xlane.f32.xlu0 %v3253_v36  ;;  %v3262_v41 = vmul.f32 %v5054_v39, %v5050_v31 }
0x17d6   :  { %3339 = vrot.lane.b32.xlu0 %v5538_v51, %s5136_s16  ;;  %s5826_s16 = smov 40  }
0x17da   :  { %3499 = vrot.lane.b32.xlu0 %v5540_v53, %s5825_s25 }
0x1849   :  { %v3255_v38 = vpop.xlane.xlu0 %3254 }
0x184a   :  { %5055 = vrcp.f32 %v3255_v38 }
0x184d   :  { %v3340_v40 = vpop.permute.xlu0 %3339 }
0x184e   :  { %4898 = vmatpush3.msra.mxu1 %v3340_v40 }
0x184f   :  { %4900 = vmatmul.mubr.msk.f32.vlgmr.msra.gmra.mxu1 %vm189_vm2, %v3262_v41  ;;  %4907 = vmatprep.subr.mxu1 %v5126_v6 }
0x1850   :  { %4908 = vmatpush3.xpose.msk.msra.mxu1 %vm189_vm2, %v3502_v42  ;;  %4909 = vmatprep.mubr.msk.f32.mxu1 %vm5127_vm1, %v5126_v6 }
0x1851   :  { %v3500_v43 = vpop.permute.xlu0 %3499  ;;  %4917 = vmatprep.subr.mxu1 %v5126_v6 }
0x1853   :  { %4910 = vmatmul.mubr.msk.f32.vlgmr.msra.gmra.mxu1 %vm189_vm2, %v3500_v43 }
0x1854   :  { %4919 = vmatprep.mubr.msk.f32.mxu1 %vm5127_vm1, %v5126_v6 }
0x1857   :  { %v5056_v44 = vpop.eup %5055 }
0x1858   :  { %v3261_v47 = vmul.f32 %v5056_v44, %v5052_v35 }
0x185a   :  { %4895 = vmatmul.mubr.msk.f32.vlgmr.msra.gmra.mxu0 %vm189_vm2, %v3261_v47 }
0x185b   :  { %4903 = vmatpush3.msra.mxu0 %v4500_v50 }
0x185c   :  { %4912 = vmatprep.subr.mxu0 %v5126_v6 }
0x190f   :  { %v3411_v52 = vpop.f32.mrf.mxu1 }
0x1911   :  { %v4901_v54 = vpop.f32.mrf.mxu1 }
0x1913   :  { %v3573_v55 = vpop.f32.mrf.mxu1 }
0x1914   :  { %v3655_v48 = vmul.f32 0.35355338, %v3573_v55 }
0x1915   :  { %v4911_v56 = vpop.f32.mrf.mxu1 }
0x1916   :  { %v3657_v57 = vadd.f32 %v3655_v48, %v5281_v27 }
0x1918   :  { %v3659_v49 = vsel %vm189_vm2, %v3657_v57, -inf }
0x1919   :  { %3660 = vmax.xlane.f32.xlu0 %v3659_v49  ;;  %v4521_v49 = vld [vmem:[%s5811_s9 + $0x38] sm:$0xff] }
0x191a   :  { %v3335_v59 = vpop.f32.mrf.mxu0 }
0x191b   :  { %4904 = vmatprep.mubr.msk.f32.mxu0 %vm189_vm2, %v3335_v59  ;;  %v4519_v59 = vld [vmem:[%s5811_s9 + $0x28] sm:$0xff] }
0x191c   :  { %v4896_v60 = vpop.f32.mrf.mxu0  ;;  %4905 = vmatmul.mubr.msk.f32.vlgmr.msra.gmra.mxu0 %vm189_vm2, %v3411_v52 }
0x191d   :  { %4913 = vmatpush3.xpose.msk.msra.mxu0 %vm189_vm2, %v3580_v58  ;;  %4914 = vmatprep.mubr.msk.f32.mxu0 %vm5127_vm1, %v5126_v6  ;;  %v4520_v58 = vld [vmem:[%s5811_s9 + $0x30] sm:$0xff]  ;;  %v4518_v60 = vld [vmem:[%s5811_s9 + $0x20] sm:$0xff] }
0x191e   :  { %4922 = vmatprep.subr.mxu0 %v5126_v6 }
0x1920   :  { %4915 = vmatmul.mubr.msk.f32.vlgmr.msra.gmra.mxu0 %vm189_vm2, %v3578_v61  ;;  %v4533_v61 = vld [vmem:[%s5813_s11 + $0x78] sm:$0xff] }
0x1921   :  { %4924 = vmatprep.mubr.msk.f32.mxu0 %vm5127_vm1, %v5126_v6 }
0x19a2   :  { %v3661_v27 = vpop.xlane.xlu0 %3660 }
0x19a3   :  { %v3665_v62 = vsub.f32 %v3657_v57, %v3661_v27  ;;  %v4532_v27 = vld [vmem:[%s5813_s11 + $0x70] sm:$0xff] }
0x19a5   :  { %v3667_v10 = vmul.f32 1.442695, %v3665_v62  ;;  %v4531_v62 = vld [vmem:[%s5813_s11 + $0x68] sm:$0xff] }
0x19a7   :  { %5057 = vpow2.f32 %v3667_v10  ;;  %v4530_v10 = vld [vmem:[%s5813_s11 + $0x60] sm:$0xff] }
0x19b4   :  { %v5058_v63 = vpop.eup %5057 }
0x19b5   :  { %v3671_v0 = vsel %vm189_vm2, %v5058_v63, 0.0 }
0x19b6   :  { %3672 = vadd.xlane.f32.xlu0 %v3671_v0 }
0x19dc   :  { %v4906_v3 = vpop.f32.mrf.mxu0 }
0x19dd   :  { %v3498_v7 = vadd.f32 %v4906_v3, %v3078_v1 }
0x19de   :  { %v3488_v11 = vpop.f32.mrf.mxu0 }
0x19df   :  { %v3497_v12 = vadd.f32 %v3488_v11, %v3073_v4 }
0x19e0   :  { %v3651_v13 = vpop.f32.mrf.mxu0 }
0x19e1   :  { %v3656_v14 = vmul.f32 0.35355338, %v3651_v13  ;;  %v4515_v13 = vld [vmem:[%s5809_s7 + $0x1] ss:$0 sm:$0xff] }
0x19e2   :  { %v4916_v15 = vpop.f32.mrf.mxu0 }
0x19e3   :  { %v3658_v16 = vadd.f32 %v3656_v14, %v5285_v33 }
0x19e5   :  { %v3662_v17 = vsel %vm189_vm2, %v3658_v16, -inf }
0x19e6   :  { %3663 = vmax.xlane.f32.xlu1 %v3662_v17 }
0x19f7   :  { %3681 = vrot.lane.b32.xlu1 %v5540_v53, %s5826_s16  ;;  %v4509_v53 = vld [vmem:[%s5807_s5 + $0x38] sm:$0xff] }
0x1a3f   :  { %v3673_v18 = vpop.xlane.xlu0 %3672 }
0x1a40   :  { %5059 = vrcp.f32 %v3673_v18  ;;  %v4517_v18 = vld [vmem:[%s5810_s8 + $0x1] ss:$0 sm:$0xff] }
0x1a4d   :  { %v5060_v19 = vpop.eup %5059 }
0x1a4e   :  { %v3679_v23 = vmul.f32 %v5060_v19, %v5058_v63 }
0x1a6f   :  { %v3664_v8 = vpop.xlane.xlu1 %3663 }
0x1a70   :  { %v3666_v20 = vsub.f32 %v3658_v16, %v3664_v8 }
0x1a72   :  { %v3669_v9 = vmul.f32 1.442695, %v3666_v20  ;;  %v4529_v20 = vld [vmem:[%s5813_s11 + $0x58] sm:$0xff] }
0x1a73   :  { %v3682_v21 = vpop.permute.xlu1 %3681 }
0x1a74   :  { %5061 = vpow2.f32 %v3669_v9  ;;  %4918 = vmatpush3.msra.mxu1 %v3682_v21  ;;  %v4528_v9 = vld [vmem:[%s5813_s11 + $0x50] sm:$0xff]  ;;  %v4527_v21 = vld [vmem:[%s5813_s11 + $0x48] sm:$0xff] }
0x1a75   :  { %4920 = vmatmul.mubr.msk.f32.vlgmr.msra.gmra.mxu1 %vm189_vm2, %v3679_v23  ;;  %4927 = vmatprep.subr.mxu1 %v4509_v53  ;;  %v4526_v23 = vld [vmem:[%s5813_s11 + $0x40] sm:$0xff] }
0x1a76   :  { %4928 = vmatpush3.msra.mxu1 %v4509_v53 }
0x1a77   :  { %4943 = vmatprep.subr.mxu1 %v4533_v61 }
0x1a81   :  { %v5062_v24 = vpop.eup %5061 }
0x1a82   :  { %v3674_v33 = vsel %vm189_vm2, %v5062_v24, 0.0 }
0x1a83   :  { %3675 = vadd.xlane.f32.xlu0 %v3674_v33 }
0x1a99   :  { %3757 = vrot.lane.b32.xlu0 %v5538_v51, %s5826_s16 }
0x1b0c   :  { %v3676_v25 = vpop.xlane.xlu0 %3675 }
0x1b0d   :  { %5063 = vrcp.f32 %v3676_v25 }
0x1b10   :  { %v3758_v26 = vpop.permute.xlu0 %3757 }
0x1b11   :  { %4923 = vmatpush3.msra.mxu0 %v3758_v26 }
0x1b12   :  { %4932 = vmatprep.subr.mxu0 %v4521_v49 }
0x1b1a   :  { %v5064_v28 = vpop.eup %5063 }
0x1b1b   :  { %v3680_v29 = vmul.f32 %v5064_v28, %v5062_v24  ;;  %v4523_v24 = vld [vmem:[%s5812_s10 + $0x1] ss:$0 sm:$0xff] }
0x1b1d   :  { %4925 = vmatmul.mubr.msk.f32.vlgmr.msra.gmra.mxu0 %vm189_vm2, %v3680_v29 }
0x1b1e   :  { %4933 = vmatpush3.msra.mxu0 %v4521_v49 }
0x1b1f   :  { %4934 = vmatprep.subr.mxu0 %v4520_v58 }
0x1b20   :  { %4935 = vmatpush3.msra.mxu0 %v4520_v58 }
0x1b21   :  { %4936 = vmatprep.subr.mxu0 %v4519_v59 }
0x1b22   :  { %4937 = vmatpush3.msra.mxu0 %v4519_v59 }
0x1b23   :  { %4938 = vmatprep.subr.mxu0 %v4518_v60 }
0x1b24   :  { %4939 = vmatpush3.msra.mxu0 %v4518_v60 }
0x1b25   :  { %4962 = vmatprep.subr.mxu0 %v5126_v6 }
0x1b35   :  { %v3753_v30 = vpop.f32.mrf.mxu1 }
0x1b36   :  { %4929 = vmatprep.mubr.msk.f32.mxu1 %vm189_vm2, %v3753_v30  ;;  %v4535_v30 = vld [vmem:[%s5814_s12 + $0x1] ss:$0 sm:$0xff] }
0x1b37   :  { %v4921_v31 = vpop.f32.mrf.mxu1 }
0x1bdd   :  { %v3829_v32 = vpop.f32.mrf.mxu0 }
0x1bde   :  { %4930 = vmatmul.mubr.msk.f32.vlgmr.msra.gmra.mxu1 %vm189_vm2, %v3829_v32 }
0x1bdf   :  { %v4926_v51 = vpop.f32.mrf.mxu0  ;;  %4944 = vmatpush3.msra.mxu1 %v4533_v61  ;;  %v4539_v61 = vld [vmem:[%s5815_s13 + $0x1] ss:$0 sm:$0xff] }
0x1be0   :  { %4945 = vmatprep.subr.mxu1 %v4532_v27 }
0x1be1   :  { %4946 = vmatpush3.msra.mxu1 %v4532_v27 }
0x1be2   :  { %4947 = vmatprep.subr.mxu1 %v4531_v62 }
0x1be3   :  { %4948 = vmatpush3.msra.mxu1 %v4531_v62 }
0x1be4   :  { %4949 = vmatprep.subr.mxu1 %v4530_v10 }
0x1be5   :  { %4950 = vmatpush3.msra.mxu1 %v4530_v10 }
0x1be6   :  { %4951 = vmatprep.subr.mxu1 %v4529_v20 }
0x1be7   :  { %4952 = vmatpush3.msra.mxu1 %v4529_v20 }
0x1be8   :  { %4953 = vmatprep.subr.mxu1 %v4528_v9 }
0x1be9   :  { %4954 = vmatpush3.msra.mxu1 %v4528_v9 }
0x1bea   :  { %4955 = vmatprep.subr.mxu1 %v4527_v21 }
0x1beb   :  { %4956 = vmatpush3.msra.mxu1 %v4527_v21 }
0x1bec   :  { %4957 = vmatprep.subr.mxu1 %v4526_v23 }
0x1bed   :  { %4958 = vmatpush3.msra.mxu1 %v4526_v23 }
0x1c9e   :  { %v4931_v5 = vpop.f32.mrf.mxu1 }
0x1c9f   :  { %v3916_v34 = vadd.f32 %v4931_v5, %v3498_v7 }
0x1ca0   :  { %v3906_v35 = vpop.f32.mrf.mxu1 }
0x1ca1   :  { %v3926_v36 = vadd.f32 %v4513_v2, %v3916_v34  ;;  %v3915_v37 = vadd.f32 %v3906_v35, %v3497_v12 }
0x1ca3   :  { %v3925_v38 = vadd.f32 %v4513_v2, %v3915_v37  ;;  %v3928_v39 = vadd.f32 %v3926_v36, %v5527_v46 }
0x1ca5   :  { %v3932_v40 = vsel %vm104_vm0, %v3928_v39, 0.0  ;;  %v3927_v41 = vadd.f32 %v3925_v38, %v5525_v45 }
0x1ca6   :  { %3933 = vadd.xlane.f32.xlu0 %v3932_v40 }
0x1ca7   :  { %v3929_v42 = vsel %vm104_vm0, %v3927_v41, 0.0 }
0x1ca8   :  { %3930 = vadd.xlane.f32.xlu1 %v3929_v42 }
0x1d2f   :  { %v3934_v43 = vpop.xlane.xlu0 %3933 }
0x1d30   :  { %v3936_v44 = vmul.f32 0.03125, %v3934_v43 }
0x1d31   :  { %v3931_v47 = vpop.xlane.xlu1 %3930 }
0x1d32   :  { %v3938_v50 = vsub.f32 %v3928_v39, %v3936_v44  ;;  %v3935_v52 = vmul.f32 0.03125, %v3931_v47 }
0x1d34   :  { %v3937_v54 = vsub.f32 %v3927_v41, %v3935_v52  ;;  %v3940_v55 = vmul.f32 %v3938_v50, %v3938_v50  ;;  %v4386_v52 = vld [vmem:[%s5804_s2] sm:$0x3] }
0x1d36   :  { %v3944_v48 = vsel %vm104_vm0, %v3940_v55, 0.0  ;;  %v3939_v56 = vmul.f32 %v3937_v54, %v3937_v54  ;;  %v4387_v55 = vmax.f32 %v4386_v52, 1.0 }
0x1d37   :  { %3945 = vadd.xlane.f32.xlu0 %v3944_v48 }
0x1d38   :  { %v3941_v57 = vsel %vm104_vm0, %v3939_v56, 0.0 }
0x1d39   :  { %3942 = vadd.xlane.f32.xlu1 %v3941_v57 }
0x1dc0   :  { %v3946_v63 = vpop.xlane.xlu0 %3945 }
0x1dc1   :  { %v3948_v0 = vmul.f32 0.03125, %v3946_v63 }
0x1dc2   :  { %v3943_v1 = vpop.xlane.xlu1 %3942 }
0x1dc3   :  { %v3950_v3 = vadd.f32 1e-05, %v3948_v0  ;;  %v3947_v4 = vmul.f32 0.03125, %v3943_v1  ;;  %v4541_v0 = vld [vmem:[%s5816_s14 + $0x1] ss:$0 sm:$0xff] }
0x1dc4   :  { %v5078_v1 = vld.sshfl [vmem:[%s5803_s1] sm:$0x11 pattern:$0x75316420]  ;;  %s5141_s1 = smov [#allocation5]  }
0x1dc5   :  { %5065 = vrsqrt.f32 %v3950_v3  ;;  %v3949_v7 = vadd.f32 1e-05, %v3947_v4  ;;  %s4413_s13 = sshll.u32 %s5141_s1, 4  ;;  %s4414_s13 = int_to_ptr.vmem [resolvable:$true] %s4413_s13 }
0x1dc6   :  { %s5099_s14 = scalar_lea.vmem %s4414_s13, 32  ;;  %p5104_p6 = scmp.lt.s32.totalorder %s4414_s13, %s4414_s13 }
0x1dc7   :  { %5067 = vrsqrt.f32 %v3949_v7  ;;  %p5100_p5 = scmp.ne.s32.totalorder %s4414_s13, %s5099_s14  ;;  %p5105_p7 = scmp.lt.s32.totalorder %s5099_s14, %s5099_s14 }
0x1dc9   :  { %p5106_p8 = por %p5105_p7, %p5104_p6 }
0x1dcb   :  { %p5107_p9 = pnand %p5106_p8, %p5100_p5 }
0x1dd2   :  { %v5066_v11 = vpop.eup %5065 }
0x1dd3   :  { %v3954_v12 = vmul.f32 %v5066_v11, %v3938_v50  ;;  %v4234_v11 = vrot.slane %v5078_v1, %v5277_v22 }
0x1dd4   :  { %v5068_v14 = vpop.eup %5067 }
0x1dd5   :  { %v3953_v15 = vmul.f32 %v5068_v14, %v3937_v54  ;;  %v3964_v16 = vmul.f32 %v4515_v13, %v3954_v12  ;;  %v5140_v54 = vmov 0   ;;  %v4227_v12 = vcombine.high %v5078_v1, %v5078_v1 }
0x1dd6   :  { %4991 = vset.pattern.permute.xlu1 %v5140_v54  ;;  %4992 = vset.pattern.permute.xlu0 %v5140_v54 }
0x1dd7   :  { %v3963_v17 = vmul.f32 %v4515_v13, %v3953_v15  ;;  %v3974_v19 = vadd.f32 %v4517_v18, %v3964_v16  ;;  %v4241_v15 = vrot.slane %v4227_v12, %v5277_v22 }
0x1dd9   :  { %v3973_v8 = vadd.f32 %v4517_v18, %v3963_v17 }
0x1ddb   :  { %4940 = vmatprep.mubr.msk.f32.mxu0 %vm104_vm0, %v3973_v8 }
0x1ddc   :  { %4941 = vmatmul.mubr.msk.f32.vlgmr.msra.gmra.mxu0 %vm104_vm0, %v3974_v19 }
0x1ddd   :  { %4964 = vmatprep.mubr.msk.f32.mxu0 %vm5127_vm1, %v5126_v6 }
0x1e9c   :  { %v4942_v33 = vpop.f32.mrf.mxu0 }
0x1e9d   :  { %v4066_v53 = vadd.f32 %v4942_v33, %v4523_v24 }
0x1e9e   :  { %v4060_v25 = vpop.f32.mrf.mxu0 }
0x1e9f   :  { %v4061_v26 = vadd.f32 %v4523_v24, %v4060_v25  ;;  %v4070_v29 = vmax.f32 %v4066_v53, 0.0 }
0x1ea1   :  { %v4069_v28 = vmax.f32 %v4061_v26, 0.0 }
0x1ea3   :  { %4959 = vmatprep.mubr.msk.f32.mxu1 %vm2028_vm3, %v4069_v28 }
0x1ea4   :  { %4960 = vmatmul.mubr.msk.f32.vlgmr.msra.gmra.mxu1 %vm2028_vm3, %v4070_v29 }
0x1f64   :  { %v4961_v31 = vpop.f32.mrf.mxu1 }
0x1f65   :  { %v4166_v32 = vadd.f32 %v4961_v31, %v4535_v30 }
0x1f66   :  { %v4160_v51 = vpop.f32.mrf.mxu1 }
0x1f67   :  { %v4161_v5 = vadd.f32 %v4535_v30, %v4160_v51  ;;  %v4170_v2 = vadd.f32 %v4166_v32, %v3974_v19 }
0x1f69   :  { %v4174_v34 = vsel %vm104_vm0, %v4170_v2, 0.0  ;;  %v4169_v35 = vadd.f32 %v4161_v5, %v3973_v8 }
0x1f6a   :  { %4175 = vadd.xlane.f32.xlu0 %v4174_v34 }
0x1f6b   :  { %v4171_v36 = vsel %vm104_vm0, %v4169_v35, 0.0 }
0x1f6c   :  { %4172 = vadd.xlane.f32.xlu1 %v4171_v36 }
0x1ff3   :  { %v4176_v37 = vpop.xlane.xlu0 %4175 }
0x1ff4   :  { %v4178_v38 = vmul.f32 0.03125, %v4176_v37 }
0x1ff5   :  { %v4173_v39 = vpop.xlane.xlu1 %4172 }
0x1ff6   :  { %v4180_v40 = vsub.f32 %v4170_v2, %v4178_v38  ;;  %v4177_v41 = vmul.f32 0.03125, %v4173_v39 }
0x1ff8   :  { %v4179_v42 = vsub.f32 %v4169_v35, %v4177_v41  ;;  %v4182_v43 = vmul.f32 %v4180_v40, %v4180_v40 }
0x1ffa   :  { %v4186_v44 = vsel %vm104_vm0, %v4182_v43, 0.0  ;;  %v4181_v47 = vmul.f32 %v4179_v42, %v4179_v42 }
0x1ffb   :  { %4187 = vadd.xlane.f32.xlu0 %v4186_v44 }
0x1ffc   :  { %v4183_v50 = vsel %vm104_vm0, %v4181_v47, 0.0 }
0x1ffd   :  { %4184 = vadd.xlane.f32.xlu1 %v4183_v50 }
0x200e   :  { %4390 = vperm.xlu1 %4991, %v4387_v55  }
0x2084   :  { %v4188_v48 = vpop.xlane.xlu0 %4187 }
0x2085   :  { %v4190_v56 = vmul.f32 0.03125, %v4188_v48 }
0x2086   :  { %v4185_v57 = vpop.xlane.xlu1 %4184 }
0x2087   :  { %v4192_v49 = vadd.f32 1e-05, %v4190_v56  ;;  %v4189_v58 = vmul.f32 0.03125, %v4185_v57 }
0x2089   :  { %5069 = vrsqrt.f32 %v4192_v49  ;;  %v4191_v59 = vadd.f32 1e-05, %v4189_v58 }
0x208a   :  { %v4391_v16 = vpop.permute.xlu1 %4390 }
0x208b   :  { %5071 = vrsqrt.f32 %v4191_v59  ;;  %v4392_v17 = vrot.slane %v4391_v16, 1 }
0x208d   :  { %5073 = vrcp.f32 %v4392_v17 }
0x208e   :  { %5075 = vrcp.f32 %v4391_v16 }
0x2096   :  { %v5070_v60 = vpop.eup %5069 }
0x2097   :  { %v4196_v27 = vmul.f32 %v5070_v60, %v4180_v40 }
0x2098   :  { %v5072_v62 = vpop.eup %5071 }
0x2099   :  { %v4195_v10 = vmul.f32 %v5072_v62, %v4179_v42  ;;  %v4206_v63 = vmul.f32 %v4539_v61, %v4196_v27 }
0x209a   :  { %v5074_v18 = vpop.eup %5073 }
0x209b   :  { %v4205_v3 = vmul.f32 %v4539_v61, %v4195_v10  ;;  %v4216_v7 = vadd.f32 %v4541_v0, %v4206_v63 }
0x209d   :  { %v4215_v4 = vadd.f32 %v4541_v0, %v4205_v3  ;;  %v4218_v14 = vadd.f32 %v4216_v7, %v5527_v46  ;;  %v5076_v46 = vpop.eup %5075 }
0x209f   :  { %v4217_v13 = vadd.f32 %v4215_v4, %v5525_v45 }
0x20a1   :  { %4963 = vmatpush3.msra.mxu0 %v4217_v13 }
0x20a2   :  { %4965 = vmatmul.mubr.msk.f32.vlgmr.msra.gmra.mxu0 %vm189_vm2, %v4234_v11  ;;  %4967 = vmatprep.subr.mxu0 %v5126_v6 }
0x20a3   :  { %4968 = vmatpush3.msra.mxu0 %v4218_v14  ;;  %4969 = vmatprep.mubr.msk.f32.mxu0 %vm5127_vm1, %v5126_v6 }
0x20a6   :  { %4970 = vmatmul.mubr.msk.f32.vlgmr.msra.gmra.mxu0 %vm189_vm2, %v4241_v15 }
0x2162   :  { %v4310_v45 = vpop.f32.mrf.mxu0 }
0x2163   :  { %v4396_v22 = vmul.f32 %v5076_v46, %v4310_v45 }
0x2164   :  { %v4966_v8 = vpop.f32.mrf.mxu0 }
0x2166   :  { %v4382_v19 = vpop.f32.mrf.mxu0 }
0x2167   :  { %v4398_v20 = vmul.f32 %v5074_v18, %v4382_v19 }
0x2168   :  { %v4971_v9 = vpop.f32.mrf.mxu0 }
0x2169   :  { %v4401_v21 = vrot.slane %v4398_v20, 7 }
0x216b   :  { %v4403_v6 = vsel %vm4402_vm4, %v4401_v21, %v4396_v22 }
0x216c   :  { %4406 = vst.msk [vmem:[#allocation5] sm:$0x3] %vm4405_vm5, %v4403_v6 }
0x216d   :  { %5110 = shalt.err (!%p5107_p9)
}
0x216e   :  { %4416 = dma.vmem_to_hbm [thread:$0]  %s4414_s13, 32, %s5817_s15, [#allocation4]  }
0x216f   :  { %5121 = dma.done.wait [#allocation4], 32  }
0x2170   :  { %5122 = vsyncadd [#allocation4], 4294967264 }
0x2171   :  { %4420 = vsyncpa [#allocation3], 1 }
0x2172   :  { %4421 = vsyncpa [#allocation4], 1 }

</bundles_post_ra>
